<compile_context>
chip_gen: v7x
topology: tpu7x:2x2x1
jax: 0.10.0
libtpu: 0.0.40
codegen_flags: <defaults>
</compile_context>

<pallas_src>
import functools
import math

import jax
import jax.numpy as jnp
from jax.experimental import pallas as pl
from jax.experimental.pallas import tpu as pltpu


def _sigmoid(x):
    return 1.0 / (1.0 + jnp.exp(-x))


def _layernorm(x, w, b, eps=1e-5):
    mu = jnp.mean(x, axis=-1, keepdims=True)
    var = jnp.mean((x - mu) ** 2, axis=-1, keepdims=True)
    return (x - mu) * jax.lax.rsqrt(var + eps) * w + b


def _round_up(x, m):
    return ((x + m - 1) // m) * m


# ----------------------------- Pallas kernel -----------------------------
#
# Fused gate/column layout (width 8H), grouped by gate then direction:
#   [ i_f | i_b | f_f | f_b | g_f | g_b | o_f | o_b ]
# Hidden/cell state layout (width 2H):  [ h_fwd | h_bwd ].

def _bilstm_kernel(x_ref, wih0_ref, whh0_ref, b0_ref,
                   wih1_ref, whh1_ref, b1_ref,
                   lnw_ref, lnb_ref,
                   out_ref, *, T, Bp, H):
    """One grid point == one fully fused 2-layer BiLSTM context encoder.

    x_ref:   (T*Bp, E)   time-major pre-embedded input (row = t*Bp + b)
    wih*:    (F, 8H)     fused fwd/bwd input projection (gate-grouped columns)
    whh*:    (2H, 8H)    block-structured recurrent weights
    b*:      (1, 8H)     fused b_ih + b_hh
    out_ref: (Bp, T*2H)  batch-major, lane-packed LayerNorm'ed output
    """
    H2 = 2 * H
    H8 = 8 * H

    # Static lane masks (one vreg each, hoisted out of the time loops).
    lane8 = jax.lax.broadcasted_iota(jnp.int32, (Bp, H8), 1)
    fwd_lane8 = (lane8 % H2) < H                        # fwd-direction columns
    tanh_lane8 = (lane8 >= 4 * H) & (lane8 < 6 * H)     # cell-candidate (g) gate
    lane2 = jax.lax.broadcasted_iota(jnp.int32, (Bp, H2), 1)
    fwd_lane2 = lane2 < H                               # fwd half of h/c state

    def run_layer(xin, wih_ref, whh_ref, b_ref):
        # Input projection for ALL time steps and BOTH directions: one matmul.
        gates_in = jnp.dot(xin, wih_ref[...],
                           preferred_element_type=jnp.float32) + b_ref[...]
        gates_in = gates_in.reshape(T, Bp, H8)          # tile-aligned split
        whh = whh_ref[...]                              # (2H, 8H)

        h = jnp.zeros((Bp, H2), jnp.float32)            # [h_fwd | h_bwd]
        c = jnp.zeros((Bp, H2), jnp.float32)
        hs = []
        for s in range(T):     # fwd consumes time s, bwd consumes time T-1-s
            gin = jnp.where(fwd_lane8, gates_in[s], gates_in[T - 1 - s])
            g = gin + jnp.dot(h, whh, preferred_element_type=jnp.float32)
            # Full-width transcendentals + static lane mask (no per-gate slices
            # for the activation pass).
            act = jnp.where(tanh_lane8, jnp.tanh(g), _sigmoid(g))
            i_g = act[:, 0 * H2:1 * H2]                 # [i_f | i_b]
            f_g = act[:, 1 * H2:2 * H2]                 # [f_f | f_b]
            g_g = act[:, 2 * H2:3 * H2]                 # [g_f | g_b]
            o_g = act[:, 3 * H2:4 * H2]                 # [o_f | o_b]
            c = f_g * c + i_g * g_g
            h = o_g * jnp.tanh(c)
            hs.append(h)
        # Recombine to per-time outputs: out_t = [h_fwd(t) | h_bwd(t)].
        return [jnp.where(fwd_lane2, hs[t], hs[T - 1 - t]) for t in range(T)]

    outs0 = run_layer(x_ref[...], wih0_ref, whh0_ref, b0_ref)
    # Time-major (T*Bp, 2H) input for layer 1 — sublane-aligned concat (Bp % 8 == 0).
    x1 = jnp.concatenate(outs0, axis=0)
    # TODO(synk): nn.LSTM inter-layer dropout (train-mode only) omitted (eval semantics).
    outs1 = run_layer(x1, wih1_ref, whh1_ref, b1_ref)

    lnw = lnw_ref[...]
    lnb = lnb_ref[...]
    # Batch-major lane-packed store: out[b, t*2H + c] = LN(out1)[t, b, c].
    for t in range(T):
        out_ref[:, t * H2:(t + 1) * H2] = _layernorm(outs1[t], lnw, lnb)


# ----------------------------- wrappers -----------------------------

def _fuse_wih(w, H):
    """(2, 4H, F) PyTorch weight_ih per direction -> (F, 8H) gate-grouped."""
    F = w.shape[2]
    wt = jnp.transpose(w, (2, 0, 1)).reshape(F, 2, 4, H)   # (F, dir, gate, H)
    wt = jnp.transpose(wt, (0, 2, 1, 3))                   # (F, gate, dir, H)
    return wt.reshape(F, 8 * H).astype(jnp.float32)


def _fuse_bias(b_ih, b_hh, H):
    """(2, 4H) + (2, 4H) -> (1, 8H) gate-grouped."""
    b = (b_ih + b_hh).reshape(2, 4, H)
    b = jnp.transpose(b, (1, 0, 2))                        # (gate, dir, H)
    return b.reshape(1, 8 * H).astype(jnp.float32)


def _fuse_whh(w, H):
    """(2, 4H, H) -> (2H, 8H) block-structured recurrent weights."""
    wf = jnp.transpose(w[0], (1, 0)).reshape(H, 4, 1, H)   # (H_in, gate, 1, H_out)
    wb = jnp.transpose(w[1], (1, 0)).reshape(H, 4, 1, H)
    zeros = jnp.zeros_like(wf)
    top = jnp.concatenate([wf, zeros], axis=2).reshape(H, 8 * H)   # rows for h_fwd
    bot = jnp.concatenate([zeros, wb], axis=2).reshape(H, 8 * H)   # rows for h_bwd
    return jnp.concatenate([top, bot], axis=0).astype(jnp.float32)


def _prep_encoder(ids_bt, p):
    """Kernel-ready operands for one BiLSTM encoder (no leading stack axis)."""
    B, T = ids_bt.shape
    H = p['w_hh_l0'].shape[2]
    Bp = _round_up(max(B, 1), 8)

    # Embedding lookup as a plain XLA gather (table never enters the kernel).
    x = p['emb'][ids_bt].astype(jnp.float32)               # (B, T, E)
    x = jnp.transpose(x, (1, 0, 2))                        # time-major (T, B, E)
    if Bp != B:
        x = jnp.pad(x, ((0, 0), (0, Bp - B), (0, 0)))
    x = x.reshape(T * Bp, -1)

    ops = dict(
        x=x,                                               # (T*Bp, E)
        wih0=_fuse_wih(p['w_ih_l0'], H),                   # (E, 8H)
        whh0=_fuse_whh(p['w_hh_l0'], H),                   # (2H, 8H)
        b0=_fuse_bias(p['b_ih_l0'], p['b_hh_l0'], H),      # (1, 8H)
        wih1=_fuse_wih(p['w_ih_l1'], H),                   # (2H, 8H)
        whh1=_fuse_whh(p['w_hh_l1'], H),                   # (2H, 8H)
        b1=_fuse_bias(p['b_ih_l1'], p['b_hh_l1'], H),      # (1, 8H)
        lnw=p['ln_w'][None, :].astype(jnp.float32),        # (1, 2H)
        lnb=p['ln_b'][None, :].astype(jnp.float32),        # (1, 2H)
    )
    return ops, Bp


_OPERAND_ORDER = ('x', 'wih0', 'whh0', 'b0', 'wih1', 'whh1', 'b1', 'lnw', 'lnb')


def _make_index_map(nd):
    def idx(g):
        return (g,) + (0,) * nd
    return idx


def _bilstm_stack_pallas(op_list, T, B, Bp, H):
    """Run G stacked BiLSTM encoders (identical shapes) in one pallas_call."""
    G = len(op_list)
    stacked = [jnp.stack([ops[name] for ops in op_list], axis=0)
               for name in _OPERAND_ORDER]
    D = 2 * H

    def spec(arr):
        return pl.BlockSpec((None,) + arr.shape[1:], _make_index_map(arr.ndim - 1))

    kernel = functools.partial(_bilstm_kernel, T=T, Bp=Bp, H=H)
    out = pl.pallas_call(
        kernel,
        out_shape=jax.ShapeDtypeStruct((G, Bp, T * D), jnp.float32),
        grid=(G,),
        in_specs=[spec(a) for a in stacked],
        out_specs=pl.BlockSpec((None, Bp, T * D), _make_index_map(2)),
        compiler_params=pltpu.CompilerParams(
            dimension_semantics=("parallel",)),
    )(*stacked)
    # (G, Bp, T*2H) batch-major lane-packed -> free reshape + batch slice.
    return out.reshape(G, Bp, T, D)[:, :B]


def mention_context_encoder_pallas(left_ids, right_ids, sentence_ids, params):
    """Returns (left, right, sentence), each (B, T, lstm_hidden_dim)."""
    encoders = [('left', left_ids), ('right', right_ids),
                ('sentence', sentence_ids)]
    H = params['left']['w_hh_l0'].shape[2]

    shapes = {ids.shape for _, ids in encoders}
    if len(shapes) == 1:
        # All three share (B, T): fuse into a single pallas_call, grid=(3,).
        B, T = left_ids.shape
        preps = [_prep_encoder(ids, params[name]) for name, ids in encoders]
        ops = [p[0] for p in preps]
        Bp = preps[0][1]
        out = _bilstm_stack_pallas(ops, T, B, Bp, H)
        return out[0], out[1], out[2]
    # Different sequence lengths: one fused kernel per encoder.
    outs = []
    for name, ids in encoders:
        B, T = ids.shape
        ops, Bp = _prep_encoder(ids, params[name])
        out = _bilstm_stack_pallas([ops], T, B, Bp, H)
        outs.append(out[0])
    return tuple(outs)


# ----------------------------- pure-JAX reference -----------------------------

def _bilstm_ref(ids, p):
    B, T = ids.shape
    H = p['w_hh_l0'].shape[2]
    x = p['emb'][ids]                                   # (B, T, E)
    for l in range(2):
        wih = p[f'w_ih_l{l}']
        whh = p[f'w_hh_l{l}']
        b = p[f'b_ih_l{l}'] + p[f'b_hh_l{l}']
        outs = []
        for d in range(2):
            h = jnp.zeros((B, H), jnp.float32)
            c = jnp.zeros((B, H), jnp.float32)
            hs = [None] * T
            steps = range(T) if d == 0 else range(T - 1, -1, -1)
            for t in steps:
                g = x[:, t, :] @ wih[d].T + h @ whh[d].T + b[d]
                i = _sigmoid(g[:, 0 * H:1 * H])
                f = _sigmoid(g[:, 1 * H:2 * H])
                gg = jnp.tanh(g[:, 2 * H:3 * H])
                o = _sigmoid(g[:, 3 * H:4 * H])
                c = f * c + i * gg
                h = o * jnp.tanh(c)
                hs[t] = h
            outs.append(jnp.stack(hs, axis=1))          # (B, T, H)
        x = jnp.concatenate(outs, axis=-1)              # (B, T, 2H)
    return _layernorm(x, p['ln_w'], p['ln_b'])


def mention_context_encoder_ref(left_ids, right_ids, sentence_ids, params):
    return (_bilstm_ref(left_ids, params['left']),
            _bilstm_ref(right_ids, params['right']),
            _bilstm_ref(sentence_ids, params['sentence']))


# ----------------------------- params -----------------------------

def _init_bilstm_params(key, vocabsize, embed_dim, lstm_hidden_dim):
    H = lstm_hidden_dim // 2
    k = 1.0 / math.sqrt(H)
    keys = jax.random.split(key, 9)

    def uni(kk, shape):
        return jax.random.uniform(kk, shape, jnp.float32, -k, k)

    emb = jax.random.normal(keys[0], (vocabsize, embed_dim), jnp.float32)
    emb = emb.at[0].set(0.0)                            # padding_idx=0
    return {
        'emb': emb,
        'w_ih_l0': uni(keys[1], (2, 4 * H, embed_dim)),
        'w_hh_l0': uni(keys[2], (2, 4 * H, H)),
        'b_ih_l0': uni(keys[3], (2, 4 * H)),
        'b_hh_l0': uni(keys[4], (2, 4 * H)),
        'w_ih_l1': uni(keys[5], (2, 4 * H, 2 * H)),
        'w_hh_l1': uni(keys[6], (2, 4 * H, H)),
        'b_ih_l1': uni(keys[7], (2, 4 * H)),
        'b_hh_l1': uni(keys[8], (2, 4 * H)),
        'ln_w': jnp.ones((2 * H,), jnp.float32),
        'ln_b': jnp.zeros((2 * H,), jnp.float32),
    }


def init_params(key, vocabsize, embed_dim, lstm_hidden_dim):
    kl, kr, ks = jax.random.split(key, 3)
    return {
        'left': _init_bilstm_params(kl, vocabsize, embed_dim, lstm_hidden_dim),
        'right': _init_bilstm_params(kr, vocabsize, embed_dim, lstm_hidden_dim),
        'sentence': _init_bilstm_params(ks, vocabsize, embed_dim, lstm_hidden_dim),
    }


if __name__ == "__main__":
    vocabsize, embed_dim, lstm_hidden_dim = 64, 16, 32
    B, T = 2, 8

    key = jax.random.PRNGKey(0)
    k1, k2, k3, kp = jax.random.split(key, 4)
    left = jax.random.randint(k1, (B, T), 1, vocabsize)
    right = jax.random.randint(k2, (B, T), 1, vocabsize)
    sentence = jax.random.randint(k3, (B, T), 1, vocabsize)
    params = init_params(kp, vocabsize, embed_dim, lstm_hidden_dim)

    out = mention_context_encoder_pallas(left, right, sentence, params)
    out = jax.block_until_ready(out)

    ref = mention_context_encoder_ref(left, right, sentence, params)
    for o, r, name in zip(out, ref, ('left', 'right', 'sentence')):
        assert o.shape == (B, T, lstm_hidden_dim), (name, o.shape)
        err = float(jnp.max(jnp.abs(o - r)))
        assert err < 5e-2, f"{name}: max abs err {err}"
    print("KERNEL_OK")
</pallas_src>

<mosaic_0001>
module attributes {stable_mosaic.version = 11 : i64} {
  func.func @_bilstm_kernel(%arg0: i32, %arg1: memref<1x64x16xf32, #tpu.memory_space<vmem>>, %arg2: memref<1x16x128xf32, #tpu.memory_space<vmem>>, %arg3: memref<1x32x128xf32, #tpu.memory_space<vmem>>, %arg4: memref<1x1x128xf32, #tpu.memory_space<vmem>>, %arg5: memref<1x32x128xf32, #tpu.memory_space<vmem>>, %arg6: memref<1x32x128xf32, #tpu.memory_space<vmem>>, %arg7: memref<1x1x128xf32, #tpu.memory_space<vmem>>, %arg8: memref<1x1x32xf32, #tpu.memory_space<vmem>>, %arg9: memref<1x1x32xf32, #tpu.memory_space<vmem>>, %arg10: memref<1x8x256xf32, #tpu.memory_space<vmem>>) attributes {dimension_semantics = [#tpu.dimension_semantics<parallel>], iteration_bounds = array<i64: 3>, scalar_prefetch = 0 : i64, scratch_operands = 0 : i64, tpu.core_type = #tpu.core_type<tc>, window_params = [{transform_indices = @transform_0, window_bounds = array<i64: 1, 64, 16>}, {transform_indices = @transform_1, window_bounds = array<i64: 1, 16, 128>}, {transform_indices = @transform_2, window_bounds = array<i64: 1, 32, 128>}, {transform_indices = @transform_3, window_bounds = array<i64: 1, 1, 128>}, {transform_indices = @transform_4, window_bounds = array<i64: 1, 32, 128>}, {transform_indices = @transform_5, window_bounds = array<i64: 1, 32, 128>}, {transform_indices = @transform_6, window_bounds = array<i64: 1, 1, 128>}, {transform_indices = @transform_7, window_bounds = array<i64: 1, 1, 32>}, {transform_indices = @transform_8, window_bounds = array<i64: 1, 1, 32>}, {transform_indices = @transform_9, window_bounds = array<i64: 1, 8, 256>}]} {
    %0 = tpu.iota {dimensions = array<i32: 1>} : vector<8x128xi32>
    %c32_i32 = arith.constant 32 : i32
    %c0_i32 = arith.constant 0 : i32
    %1 = arith.cmpi eq, %c32_i32, %c0_i32 : i32
    %c1_i32 = arith.constant 1 : i32
    %2 = arith.select %1, %c1_i32, %c32_i32 : i32
    %3 = vector.broadcast %2 : i32 to vector<8x128xi32>
    %4 = arith.remsi %0, %3 : vector<8x128xi32>
    %c0_i32_0 = arith.constant 0 : i32
    %5 = vector.broadcast %c0_i32_0 : i32 to vector<8x128xi32>
    %6 = arith.cmpi ne, %4, %5 : vector<8x128xi32>
    %c0_i32_1 = arith.constant 0 : i32
    %7 = vector.broadcast %c0_i32_1 : i32 to vector<8x128xi32>
    %8 = arith.cmpi slt, %4, %7 : vector<8x128xi32>
    %c0_i32_2 = arith.constant 0 : i32
    %9 = arith.cmpi slt, %2, %c0_i32_2 : i32
    %10 = vector.broadcast %9 : i1 to vector<8x128xi1>
    %11 = vector.broadcast %10 : vector<8x128xi1> to vector<8x128xi1>
    %12 = arith.xori %8, %11 : vector<8x128xi1>
    %13 = arith.andi %12, %6 : vector<8x128xi1>
    %14 = vector.broadcast %2 : i32 to vector<8x128xi32>
    %15 = arith.addi %4, %14 : vector<8x128xi32>
    %16 = arith.select %13, %15, %4 : vector<8x128xi1>, vector<8x128xi32>
    %c16_i32 = arith.constant 16 : i32
    %17 = vector.broadcast %c16_i32 : i32 to vector<8x128xi32>
    %18 = arith.cmpi slt, %16, %17 : vector<8x128xi32>
    %c64_i32 = arith.constant 64 : i32
    %19 = vector.broadcast %c64_i32 : i32 to vector<8x128xi32>
    %20 = arith.cmpi sge, %0, %19 : vector<8x128xi32>
    %c96_i32 = arith.constant 96 : i32
    %21 = vector.broadcast %c96_i32 : i32 to vector<8x128xi32>
    %22 = arith.cmpi slt, %0, %21 : vector<8x128xi32>
    %23 = arith.andi %20, %22 : vector<8x128xi1>
    %24 = tpu.iota {dimensions = array<i32: 1>} : vector<8x32xi32>
    %c16_i32_3 = arith.constant 16 : i32
    %25 = vector.broadcast %c16_i32_3 : i32 to vector<8x32xi32>
    %26 = arith.cmpi slt, %24, %25 : vector<8x32xi32>
    %c0 = arith.constant 0 : index
    %c0_4 = arith.constant 0 : index
    %c0_5 = arith.constant 0 : index
    %27 = vector.load %arg1[%c0, %c0_4, %c0_5] : memref<1x64x16xf32, #tpu.memory_space<vmem>>, vector<1x64x16xf32>
    %28 = vector.shape_cast %27 : vector<1x64x16xf32> to vector<64x16xf32>
    %c0_6 = arith.constant 0 : index
    %c0_7 = arith.constant 0 : index
    %c0_8 = arith.constant 0 : index
    %29 = vector.load %arg2[%c0_6, %c0_7, %c0_8] : memref<1x16x128xf32, #tpu.memory_space<vmem>>, vector<1x16x128xf32>
    %30 = vector.shape_cast %29 : vector<1x16x128xf32> to vector<16x128xf32>
    %cst = arith.constant dense<0.000000e+00> : vector<64x128xf32>
    %31 = tpu.matmul %28, %30, %cst {dimension_numbers = #tpu.dot_dimension_numbers<[1], [0], [0], [1], [0, 0, 1, 1], [], []>} : vector<64x16xf32>, vector<16x128xf32>, vector<64x128xf32> -> vector<64x128xf32>
    %c0_9 = arith.constant 0 : index
    %c0_10 = arith.constant 0 : index
    %c0_11 = arith.constant 0 : index
    %32 = vector.load %arg4[%c0_9, %c0_10, %c0_11] : memref<1x1x128xf32, #tpu.memory_space<vmem>>, vector<1x1x128xf32>
    %33 = vector.shape_cast %32 : vector<1x1x128xf32> to vector<1x128xf32>
    %34 = vector.broadcast %33 : vector<1x128xf32> to vector<64x128xf32>
    %35 = arith.addf %31, %34 : vector<64x128xf32>
    %36 = vector.shape_cast %35 : vector<64x128xf32> to vector<8x8x128xf32>
    %c0_12 = arith.constant 0 : index
    %c0_13 = arith.constant 0 : index
    %c0_14 = arith.constant 0 : index
    %37 = vector.load %arg3[%c0_12, %c0_13, %c0_14] : memref<1x32x128xf32, #tpu.memory_space<vmem>>, vector<1x32x128xf32>
    %38 = vector.shape_cast %37 : vector<1x32x128xf32> to vector<32x128xf32>
    %cst_15 = arith.constant 0.000000e+00 : f32
    %39 = vector.broadcast %cst_15 : f32 to vector<8x32xf32>
    %cst_16 = arith.constant 0.000000e+00 : f32
    %40 = vector.broadcast %cst_16 : f32 to vector<8x32xf32>
    %41 = vector.extract_strided_slice %36 {offsets = [0, 0, 0], sizes = [1, 8, 128], strides = [1, 1, 1]} : vector<8x8x128xf32> to vector<1x8x128xf32>
    %42 = vector.shape_cast %41 : vector<1x8x128xf32> to vector<8x128xf32>
    %43 = vector.extract_strided_slice %36 {offsets = [7, 0, 0], sizes = [1, 8, 128], strides = [1, 1, 1]} : vector<8x8x128xf32> to vector<1x8x128xf32>
    %44 = vector.shape_cast %43 : vector<1x8x128xf32> to vector<8x128xf32>
    %45 = arith.select %18, %42, %44 : vector<8x128xi1>, vector<8x128xf32>
    %cst_17 = arith.constant dense<0.000000e+00> : vector<8x128xf32>
    %46 = tpu.matmul %39, %38, %cst_17 {dimension_numbers = #tpu.dot_dimension_numbers<[1], [0], [0], [1], [0, 0, 1, 1], [], []>} : vector<8x32xf32>, vector<32x128xf32>, vector<8x128xf32> -> vector<8x128xf32>
    %47 = arith.addf %45, %46 : vector<8x128xf32>
    %48 = math.tanh %47 : vector<8x128xf32>
    %cst_18 = arith.constant 0.000000e+00 : f32
    %49 = vector.broadcast %cst_18 : f32 to vector<8x128xf32>
    %50 = arith.subf %49, %47 : vector<8x128xf32>
    %51 = math.exp %50 : vector<8x128xf32>
    %cst_19 = arith.constant 1.000000e+00 : f32
    %52 = vector.broadcast %cst_19 : f32 to vector<8x128xf32>
    %53 = arith.addf %52, %51 : vector<8x128xf32>
    %cst_20 = arith.constant 1.000000e+00 : f32
    %54 = vector.broadcast %cst_20 : f32 to vector<8x128xf32>
    %55 = arith.divf %54, %53 : vector<8x128xf32>
    %56 = arith.select %23, %48, %55 : vector<8x128xi1>, vector<8x128xf32>
    %57 = vector.extract_strided_slice %56 {offsets = [0, 0], sizes = [8, 32], strides = [1, 1]} : vector<8x128xf32> to vector<8x32xf32>
    %58 = vector.extract_strided_slice %56 {offsets = [0, 32], sizes = [8, 32], strides = [1, 1]} : vector<8x128xf32> to vector<8x32xf32>
    %59 = vector.extract_strided_slice %56 {offsets = [0, 64], sizes = [8, 32], strides = [1, 1]} : vector<8x128xf32> to vector<8x32xf32>
    %60 = vector.extract_strided_slice %56 {offsets = [0, 96], sizes = [8, 32], strides = [1, 1]} : vector<8x128xf32> to vector<8x32xf32>
    %61 = arith.mulf %58, %40 : vector<8x32xf32>
    %62 = arith.mulf %57, %59 : vector<8x32xf32>
    %63 = arith.addf %61, %62 : vector<8x32xf32>
    %64 = math.tanh %63 : vector<8x32xf32>
    %65 = arith.mulf %60, %64 : vector<8x32xf32>
    %66 = vector.extract_strided_slice %36 {offsets = [1, 0, 0], sizes = [1, 8, 128], strides = [1, 1, 1]} : vector<8x8x128xf32> to vector<1x8x128xf32>
    %67 = vector.shape_cast %66 : vector<1x8x128xf32> to vector<8x128xf32>
    %68 = vector.extract_strided_slice %36 {offsets = [6, 0, 0], sizes = [1, 8, 128], strides = [1, 1, 1]} : vector<8x8x128xf32> to vector<1x8x128xf32>
    %69 = vector.shape_cast %68 : vector<1x8x128xf32> to vector<8x128xf32>
    %70 = arith.select %18, %67, %69 : vector<8x128xi1>, vector<8x128xf32>
    %cst_21 = arith.constant dense<0.000000e+00> : vector<8x128xf32>
    %71 = tpu.matmul %65, %38, %cst_21 {dimension_numbers = #tpu.dot_dimension_numbers<[1], [0], [0], [1], [0, 0, 1, 1], [], []>} : vector<8x32xf32>, vector<32x128xf32>, vector<8x128xf32> -> vector<8x128xf32>
    %72 = arith.addf %70, %71 : vector<8x128xf32>
    %73 = math.tanh %72 : vector<8x128xf32>
    %cst_22 = arith.constant 0.000000e+00 : f32
    %74 = vector.broadcast %cst_22 : f32 to vector<8x128xf32>
    %75 = arith.subf %74, %72 : vector<8x128xf32>
    %76 = math.exp %75 : vector<8x128xf32>
    %cst_23 = arith.constant 1.000000e+00 : f32
    %77 = vector.broadcast %cst_23 : f32 to vector<8x128xf32>
    %78 = arith.addf %77, %76 : vector<8x128xf32>
    %cst_24 = arith.constant 1.000000e+00 : f32
    %79 = vector.broadcast %cst_24 : f32 to vector<8x128xf32>
    %80 = arith.divf %79, %78 : vector<8x128xf32>
    %81 = arith.select %23, %73, %80 : vector<8x128xi1>, vector<8x128xf32>
    %82 = vector.extract_strided_slice %81 {offsets = [0, 0], sizes = [8, 32], strides = [1, 1]} : vector<8x128xf32> to vector<8x32xf32>
    %83 = vector.extract_strided_slice %81 {offsets = [0, 32], sizes = [8, 32], strides = [1, 1]} : vector<8x128xf32> to vector<8x32xf32>
    %84 = vector.extract_strided_slice %81 {offsets = [0, 64], sizes = [8, 32], strides = [1, 1]} : vector<8x128xf32> to vector<8x32xf32>
    %85 = vector.extract_strided_slice %81 {offsets = [0, 96], sizes = [8, 32], strides = [1, 1]} : vector<8x128xf32> to vector<8x32xf32>
    %86 = arith.mulf %83, %63 : vector<8x32xf32>
    %87 = arith.mulf %82, %84 : vector<8x32xf32>
    %88 = arith.addf %86, %87 : vector<8x32xf32>
    %89 = math.tanh %88 : vector<8x32xf32>
    %90 = arith.mulf %85, %89 : vector<8x32xf32>
    %91 = vector.extract_strided_slice %36 {offsets = [2, 0, 0], sizes = [1, 8, 128], strides = [1, 1, 1]} : vector<8x8x128xf32> to vector<1x8x128xf32>
    %92 = vector.shape_cast %91 : vector<1x8x128xf32> to vector<8x128xf32>
    %93 = vector.extract_strided_slice %36 {offsets = [5, 0, 0], sizes = [1, 8, 128], strides = [1, 1, 1]} : vector<8x8x128xf32> to vector<1x8x128xf32>
    %94 = vector.shape_cast %93 : vector<1x8x128xf32> to vector<8x128xf32>
    %95 = arith.select %18, %92, %94 : vector<8x128xi1>, vector<8x128xf32>
    %cst_25 = arith.constant dense<0.000000e+00> : vector<8x128xf32>
    %96 = tpu.matmul %90, %38, %cst_25 {dimension_numbers = #tpu.dot_dimension_numbers<[1], [0], [0], [1], [0, 0, 1, 1], [], []>} : vector<8x32xf32>, vector<32x128xf32>, vector<8x128xf32> -> vector<8x128xf32>
    %97 = arith.addf %95, %96 : vector<8x128xf32>
    %98 = math.tanh %97 : vector<8x128xf32>
    %cst_26 = arith.constant 0.000000e+00 : f32
    %99 = vector.broadcast %cst_26 : f32 to vector<8x128xf32>
    %100 = arith.subf %99, %97 : vector<8x128xf32>
    %101 = math.exp %100 : vector<8x128xf32>
    %cst_27 = arith.constant 1.000000e+00 : f32
    %102 = vector.broadcast %cst_27 : f32 to vector<8x128xf32>
    %103 = arith.addf %102, %101 : vector<8x128xf32>
    %cst_28 = arith.constant 1.000000e+00 : f32
    %104 = vector.broadcast %cst_28 : f32 to vector<8x128xf32>
    %105 = arith.divf %104, %103 : vector<8x128xf32>
    %106 = arith.select %23, %98, %105 : vector<8x128xi1>, vector<8x128xf32>
    %107 = vector.extract_strided_slice %106 {offsets = [0, 0], sizes = [8, 32], strides = [1, 1]} : vector<8x128xf32> to vector<8x32xf32>
    %108 = vector.extract_strided_slice %106 {offsets = [0, 32], sizes = [8, 32], strides = [1, 1]} : vector<8x128xf32> to vector<8x32xf32>
    %109 = vector.extract_strided_slice %106 {offsets = [0, 64], sizes = [8, 32], strides = [1, 1]} : vector<8x128xf32> to vector<8x32xf32>
    %110 = vector.extract_strided_slice %106 {offsets = [0, 96], sizes = [8, 32], strides = [1, 1]} : vector<8x128xf32> to vector<8x32xf32>
    %111 = arith.mulf %108, %88 : vector<8x32xf32>
    %112 = arith.mulf %107, %109 : vector<8x32xf32>
    %113 = arith.addf %111, %112 : vector<8x32xf32>
    %114 = math.tanh %113 : vector<8x32xf32>
    %115 = arith.mulf %110, %114 : vector<8x32xf32>
    %116 = vector.extract_strided_slice %36 {offsets = [3, 0, 0], sizes = [1, 8, 128], strides = [1, 1, 1]} : vector<8x8x128xf32> to vector<1x8x128xf32>
    %117 = vector.shape_cast %116 : vector<1x8x128xf32> to vector<8x128xf32>
    %118 = vector.extract_strided_slice %36 {offsets = [4, 0, 0], sizes = [1, 8, 128], strides = [1, 1, 1]} : vector<8x8x128xf32> to vector<1x8x128xf32>
    %119 = vector.shape_cast %118 : vector<1x8x128xf32> to vector<8x128xf32>
    %120 = arith.select %18, %117, %119 : vector<8x128xi1>, vector<8x128xf32>
    %cst_29 = arith.constant dense<0.000000e+00> : vector<8x128xf32>
    %121 = tpu.matmul %115, %38, %cst_29 {dimension_numbers = #tpu.dot_dimension_numbers<[1], [0], [0], [1], [0, 0, 1, 1], [], []>} : vector<8x32xf32>, vector<32x128xf32>, vector<8x128xf32> -> vector<8x128xf32>
    %122 = arith.addf %120, %121 : vector<8x128xf32>
    %123 = math.tanh %122 : vector<8x128xf32>
    %cst_30 = arith.constant 0.000000e+00 : f32
    %124 = vector.broadcast %cst_30 : f32 to vector<8x128xf32>
    %125 = arith.subf %124, %122 : vector<8x128xf32>
    %126 = math.exp %125 : vector<8x128xf32>
    %cst_31 = arith.constant 1.000000e+00 : f32
    %127 = vector.broadcast %cst_31 : f32 to vector<8x128xf32>
    %128 = arith.addf %127, %126 : vector<8x128xf32>
    %cst_32 = arith.constant 1.000000e+00 : f32
    %129 = vector.broadcast %cst_32 : f32 to vector<8x128xf32>
    %130 = arith.divf %129, %128 : vector<8x128xf32>
    %131 = arith.select %23, %123, %130 : vector<8x128xi1>, vector<8x128xf32>
    %132 = vector.extract_strided_slice %131 {offsets = [0, 0], sizes = [8, 32], strides = [1, 1]} : vector<8x128xf32> to vector<8x32xf32>
    %133 = vector.extract_strided_slice %131 {offsets = [0, 32], sizes = [8, 32], strides = [1, 1]} : vector<8x128xf32> to vector<8x32xf32>
    %134 = vector.extract_strided_slice %131 {offsets = [0, 64], sizes = [8, 32], strides = [1, 1]} : vector<8x128xf32> to vector<8x32xf32>
    %135 = vector.extract_strided_slice %131 {offsets = [0, 96], sizes = [8, 32], strides = [1, 1]} : vector<8x128xf32> to vector<8x32xf32>
    %136 = arith.mulf %133, %113 : vector<8x32xf32>
    %137 = arith.mulf %132, %134 : vector<8x32xf32>
    %138 = arith.addf %136, %137 : vector<8x32xf32>
    %139 = math.tanh %138 : vector<8x32xf32>
    %140 = arith.mulf %135, %139 : vector<8x32xf32>
    %141 = vector.extract_strided_slice %36 {offsets = [4, 0, 0], sizes = [1, 8, 128], strides = [1, 1, 1]} : vector<8x8x128xf32> to vector<1x8x128xf32>
    %142 = vector.shape_cast %141 : vector<1x8x128xf32> to vector<8x128xf32>
    %143 = vector.extract_strided_slice %36 {offsets = [3, 0, 0], sizes = [1, 8, 128], strides = [1, 1, 1]} : vector<8x8x128xf32> to vector<1x8x128xf32>
    %144 = vector.shape_cast %143 : vector<1x8x128xf32> to vector<8x128xf32>
    %145 = arith.select %18, %142, %144 : vector<8x128xi1>, vector<8x128xf32>
    %cst_33 = arith.constant dense<0.000000e+00> : vector<8x128xf32>
    %146 = tpu.matmul %140, %38, %cst_33 {dimension_numbers = #tpu.dot_dimension_numbers<[1], [0], [0], [1], [0, 0, 1, 1], [], []>} : vector<8x32xf32>, vector<32x128xf32>, vector<8x128xf32> -> vector<8x128xf32>
    %147 = arith.addf %145, %146 : vector<8x128xf32>
    %148 = math.tanh %147 : vector<8x128xf32>
    %cst_34 = arith.constant 0.000000e+00 : f32
    %149 = vector.broadcast %cst_34 : f32 to vector<8x128xf32>
    %150 = arith.subf %149, %147 : vector<8x128xf32>
    %151 = math.exp %150 : vector<8x128xf32>
    %cst_35 = arith.constant 1.000000e+00 : f32
    %152 = vector.broadcast %cst_35 : f32 to vector<8x128xf32>
    %153 = arith.addf %152, %151 : vector<8x128xf32>
    %cst_36 = arith.constant 1.000000e+00 : f32
    %154 = vector.broadcast %cst_36 : f32 to vector<8x128xf32>
    %155 = arith.divf %154, %153 : vector<8x128xf32>
    %156 = arith.select %23, %148, %155 : vector<8x128xi1>, vector<8x128xf32>
    %157 = vector.extract_strided_slice %156 {offsets = [0, 0], sizes = [8, 32], strides = [1, 1]} : vector<8x128xf32> to vector<8x32xf32>
    %158 = vector.extract_strided_slice %156 {offsets = [0, 32], sizes = [8, 32], strides = [1, 1]} : vector<8x128xf32> to vector<8x32xf32>
    %159 = vector.extract_strided_slice %156 {offsets = [0, 64], sizes = [8, 32], strides = [1, 1]} : vector<8x128xf32> to vector<8x32xf32>
    %160 = vector.extract_strided_slice %156 {offsets = [0, 96], sizes = [8, 32], strides = [1, 1]} : vector<8x128xf32> to vector<8x32xf32>
    %161 = arith.mulf %158, %138 : vector<8x32xf32>
    %162 = arith.mulf %157, %159 : vector<8x32xf32>
    %163 = arith.addf %161, %162 : vector<8x32xf32>
    %164 = math.tanh %163 : vector<8x32xf32>
    %165 = arith.mulf %160, %164 : vector<8x32xf32>
    %166 = vector.extract_strided_slice %36 {offsets = [5, 0, 0], sizes = [1, 8, 128], strides = [1, 1, 1]} : vector<8x8x128xf32> to vector<1x8x128xf32>
    %167 = vector.shape_cast %166 : vector<1x8x128xf32> to vector<8x128xf32>
    %168 = vector.extract_strided_slice %36 {offsets = [2, 0, 0], sizes = [1, 8, 128], strides = [1, 1, 1]} : vector<8x8x128xf32> to vector<1x8x128xf32>
    %169 = vector.shape_cast %168 : vector<1x8x128xf32> to vector<8x128xf32>
    %170 = arith.select %18, %167, %169 : vector<8x128xi1>, vector<8x128xf32>
    %cst_37 = arith.constant dense<0.000000e+00> : vector<8x128xf32>
    %171 = tpu.matmul %165, %38, %cst_37 {dimension_numbers = #tpu.dot_dimension_numbers<[1], [0], [0], [1], [0, 0, 1, 1], [], []>} : vector<8x32xf32>, vector<32x128xf32>, vector<8x128xf32> -> vector<8x128xf32>
    %172 = arith.addf %170, %171 : vector<8x128xf32>
    %173 = math.tanh %172 : vector<8x128xf32>
    %cst_38 = arith.constant 0.000000e+00 : f32
    %174 = vector.broadcast %cst_38 : f32 to vector<8x128xf32>
    %175 = arith.subf %174, %172 : vector<8x128xf32>
    %176 = math.exp %175 : vector<8x128xf32>
    %cst_39 = arith.constant 1.000000e+00 : f32
    %177 = vector.broadcast %cst_39 : f32 to vector<8x128xf32>
    %178 = arith.addf %177, %176 : vector<8x128xf32>
    %cst_40 = arith.constant 1.000000e+00 : f32
    %179 = vector.broadcast %cst_40 : f32 to vector<8x128xf32>
    %180 = arith.divf %179, %178 : vector<8x128xf32>
    %181 = arith.select %23, %173, %180 : vector<8x128xi1>, vector<8x128xf32>
    %182 = vector.extract_strided_slice %181 {offsets = [0, 0], sizes = [8, 32], strides = [1, 1]} : vector<8x128xf32> to vector<8x32xf32>
    %183 = vector.extract_strided_slice %181 {offsets = [0, 32], sizes = [8, 32], strides = [1, 1]} : vector<8x128xf32> to vector<8x32xf32>
    %184 = vector.extract_strided_slice %181 {offsets = [0, 64], sizes = [8, 32], strides = [1, 1]} : vector<8x128xf32> to vector<8x32xf32>
    %185 = vector.extract_strided_slice %181 {offsets = [0, 96], sizes = [8, 32], strides = [1, 1]} : vector<8x128xf32> to vector<8x32xf32>
    %186 = arith.mulf %183, %163 : vector<8x32xf32>
    %187 = arith.mulf %182, %184 : vector<8x32xf32>
    %188 = arith.addf %186, %187 : vector<8x32xf32>
    %189 = math.tanh %188 : vector<8x32xf32>
    %190 = arith.mulf %185, %189 : vector<8x32xf32>
    %191 = vector.extract_strided_slice %36 {offsets = [6, 0, 0], sizes = [1, 8, 128], strides = [1, 1, 1]} : vector<8x8x128xf32> to vector<1x8x128xf32>
    %192 = vector.shape_cast %191 : vector<1x8x128xf32> to vector<8x128xf32>
    %193 = vector.extract_strided_slice %36 {offsets = [1, 0, 0], sizes = [1, 8, 128], strides = [1, 1, 1]} : vector<8x8x128xf32> to vector<1x8x128xf32>
    %194 = vector.shape_cast %193 : vector<1x8x128xf32> to vector<8x128xf32>
    %195 = arith.select %18, %192, %194 : vector<8x128xi1>, vector<8x128xf32>
    %cst_41 = arith.constant dense<0.000000e+00> : vector<8x128xf32>
    %196 = tpu.matmul %190, %38, %cst_41 {dimension_numbers = #tpu.dot_dimension_numbers<[1], [0], [0], [1], [0, 0, 1, 1], [], []>} : vector<8x32xf32>, vector<32x128xf32>, vector<8x128xf32> -> vector<8x128xf32>
    %197 = arith.addf %195, %196 : vector<8x128xf32>
    %198 = math.tanh %197 : vector<8x128xf32>
    %cst_42 = arith.constant 0.000000e+00 : f32
    %199 = vector.broadcast %cst_42 : f32 to vector<8x128xf32>
    %200 = arith.subf %199, %197 : vector<8x128xf32>
    %201 = math.exp %200 : vector<8x128xf32>
    %cst_43 = arith.constant 1.000000e+00 : f32
    %202 = vector.broadcast %cst_43 : f32 to vector<8x128xf32>
    %203 = arith.addf %202, %201 : vector<8x128xf32>
    %cst_44 = arith.constant 1.000000e+00 : f32
    %204 = vector.broadcast %cst_44 : f32 to vector<8x128xf32>
    %205 = arith.divf %204, %203 : vector<8x128xf32>
    %206 = arith.select %23, %198, %205 : vector<8x128xi1>, vector<8x128xf32>
    %207 = vector.extract_strided_slice %206 {offsets = [0, 0], sizes = [8, 32], strides = [1, 1]} : vector<8x128xf32> to vector<8x32xf32>
    %208 = vector.extract_strided_slice %206 {offsets = [0, 32], sizes = [8, 32], strides = [1, 1]} : vector<8x128xf32> to vector<8x32xf32>
    %209 = vector.extract_strided_slice %206 {offsets = [0, 64], sizes = [8, 32], strides = [1, 1]} : vector<8x128xf32> to vector<8x32xf32>
    %210 = vector.extract_strided_slice %206 {offsets = [0, 96], sizes = [8, 32], strides = [1, 1]} : vector<8x128xf32> to vector<8x32xf32>
    %211 = arith.mulf %208, %188 : vector<8x32xf32>
    %212 = arith.mulf %207, %209 : vector<8x32xf32>
    %213 = arith.addf %211, %212 : vector<8x32xf32>
    %214 = math.tanh %213 : vector<8x32xf32>
    %215 = arith.mulf %210, %214 : vector<8x32xf32>
    %216 = vector.extract_strided_slice %36 {offsets = [7, 0, 0], sizes = [1, 8, 128], strides = [1, 1, 1]} : vector<8x8x128xf32> to vector<1x8x128xf32>
    %217 = vector.shape_cast %216 : vector<1x8x128xf32> to vector<8x128xf32>
    %218 = vector.extract_strided_slice %36 {offsets = [0, 0, 0], sizes = [1, 8, 128], strides = [1, 1, 1]} : vector<8x8x128xf32> to vector<1x8x128xf32>
    %219 = vector.shape_cast %218 : vector<1x8x128xf32> to vector<8x128xf32>
    %220 = arith.select %18, %217, %219 : vector<8x128xi1>, vector<8x128xf32>
    %cst_45 = arith.constant dense<0.000000e+00> : vector<8x128xf32>
    %221 = tpu.matmul %215, %38, %cst_45 {dimension_numbers = #tpu.dot_dimension_numbers<[1], [0], [0], [1], [0, 0, 1, 1], [], []>} : vector<8x32xf32>, vector<32x128xf32>, vector<8x128xf32> -> vector<8x128xf32>
    %222 = arith.addf %220, %221 : vector<8x128xf32>
    %223 = math.tanh %222 : vector<8x128xf32>
    %cst_46 = arith.constant 0.000000e+00 : f32
    %224 = vector.broadcast %cst_46 : f32 to vector<8x128xf32>
    %225 = arith.subf %224, %222 : vector<8x128xf32>
    %226 = math.exp %225 : vector<8x128xf32>
    %cst_47 = arith.constant 1.000000e+00 : f32
    %227 = vector.broadcast %cst_47 : f32 to vector<8x128xf32>
    %228 = arith.addf %227, %226 : vector<8x128xf32>
    %cst_48 = arith.constant 1.000000e+00 : f32
    %229 = vector.broadcast %cst_48 : f32 to vector<8x128xf32>
    %230 = arith.divf %229, %228 : vector<8x128xf32>
    %231 = arith.select %23, %223, %230 : vector<8x128xi1>, vector<8x128xf32>
    %232 = vector.extract_strided_slice %231 {offsets = [0, 0], sizes = [8, 32], strides = [1, 1]} : vector<8x128xf32> to vector<8x32xf32>
    %233 = vector.extract_strided_slice %231 {offsets = [0, 32], sizes = [8, 32], strides = [1, 1]} : vector<8x128xf32> to vector<8x32xf32>
    %234 = vector.extract_strided_slice %231 {offsets = [0, 64], sizes = [8, 32], strides = [1, 1]} : vector<8x128xf32> to vector<8x32xf32>
    %235 = vector.extract_strided_slice %231 {offsets = [0, 96], sizes = [8, 32], strides = [1, 1]} : vector<8x128xf32> to vector<8x32xf32>
    %236 = arith.mulf %233, %213 : vector<8x32xf32>
    %237 = arith.mulf %232, %234 : vector<8x32xf32>
    %238 = arith.addf %236, %237 : vector<8x32xf32>
    %239 = math.tanh %238 : vector<8x32xf32>
    %240 = arith.mulf %235, %239 : vector<8x32xf32>
    %241 = arith.select %26, %65, %240 : vector<8x32xi1>, vector<8x32xf32>
    %242 = arith.select %26, %90, %215 : vector<8x32xi1>, vector<8x32xf32>
    %243 = arith.select %26, %115, %190 : vector<8x32xi1>, vector<8x32xf32>
    %244 = arith.select %26, %140, %165 : vector<8x32xi1>, vector<8x32xf32>
    %245 = arith.select %26, %165, %140 : vector<8x32xi1>, vector<8x32xf32>
    %246 = arith.select %26, %190, %115 : vector<8x32xi1>, vector<8x32xf32>
    %247 = arith.select %26, %215, %90 : vector<8x32xi1>, vector<8x32xf32>
    %248 = arith.select %26, %240, %65 : vector<8x32xi1>, vector<8x32xf32>
    %249 = tpu.concatenate %241, %242, %243, %244, %245, %246, %247, %248 in 0 : vector<8x32xf32>, vector<8x32xf32>, vector<8x32xf32>, vector<8x32xf32>, vector<8x32xf32>, vector<8x32xf32>, vector<8x32xf32>, vector<8x32xf32> -> vector<64x32xf32>
    %c0_49 = arith.constant 0 : index
    %c0_50 = arith.constant 0 : index
    %c0_51 = arith.constant 0 : index
    %250 = vector.load %arg5[%c0_49, %c0_50, %c0_51] : memref<1x32x128xf32, #tpu.memory_space<vmem>>, vector<1x32x128xf32>
    %251 = vector.shape_cast %250 : vector<1x32x128xf32> to vector<32x128xf32>
    %cst_52 = arith.constant dense<0.000000e+00> : vector<64x128xf32>
    %252 = tpu.matmul %249, %251, %cst_52 {dimension_numbers = #tpu.dot_dimension_numbers<[1], [0], [0], [1], [0, 0, 1, 1], [], []>} : vector<64x32xf32>, vector<32x128xf32>, vector<64x128xf32> -> vector<64x128xf32>
    %c0_53 = arith.constant 0 : index
    %c0_54 = arith.constant 0 : index
    %c0_55 = arith.constant 0 : index
    %253 = vector.load %arg7[%c0_53, %c0_54, %c0_55] : memref<1x1x128xf32, #tpu.memory_space<vmem>>, vector<1x1x128xf32>
    %254 = vector.shape_cast %253 : vector<1x1x128xf32> to vector<1x128xf32>
    %255 = vector.broadcast %254 : vector<1x128xf32> to vector<64x128xf32>
    %256 = arith.addf %252, %255 : vector<64x128xf32>
    %257 = vector.shape_cast %256 : vector<64x128xf32> to vector<8x8x128xf32>
    %c0_56 = arith.constant 0 : index
    %c0_57 = arith.constant 0 : index
    %c0_58 = arith.constant 0 : index
    %258 = vector.load %arg6[%c0_56, %c0_57, %c0_58] : memref<1x32x128xf32, #tpu.memory_space<vmem>>, vector<1x32x128xf32>
    %259 = vector.shape_cast %258 : vector<1x32x128xf32> to vector<32x128xf32>
    %cst_59 = arith.constant 0.000000e+00 : f32
    %260 = vector.broadcast %cst_59 : f32 to vector<8x32xf32>
    %cst_60 = arith.constant 0.000000e+00 : f32
    %261 = vector.broadcast %cst_60 : f32 to vector<8x32xf32>
    %262 = vector.extract_strided_slice %257 {offsets = [0, 0, 0], sizes = [1, 8, 128], strides = [1, 1, 1]} : vector<8x8x128xf32> to vector<1x8x128xf32>
    %263 = vector.shape_cast %262 : vector<1x8x128xf32> to vector<8x128xf32>
    %264 = vector.extract_strided_slice %257 {offsets = [7, 0, 0], sizes = [1, 8, 128], strides = [1, 1, 1]} : vector<8x8x128xf32> to vector<1x8x128xf32>
    %265 = vector.shape_cast %264 : vector<1x8x128xf32> to vector<8x128xf32>
    %266 = arith.select %18, %263, %265 : vector<8x128xi1>, vector<8x128xf32>
    %cst_61 = arith.constant dense<0.000000e+00> : vector<8x128xf32>
    %267 = tpu.matmul %260, %259, %cst_61 {dimension_numbers = #tpu.dot_dimension_numbers<[1], [0], [0], [1], [0, 0, 1, 1], [], []>} : vector<8x32xf32>, vector<32x128xf32>, vector<8x128xf32> -> vector<8x128xf32>
    %268 = arith.addf %266, %267 : vector<8x128xf32>
    %269 = math.tanh %268 : vector<8x128xf32>
    %cst_62 = arith.constant 0.000000e+00 : f32
    %270 = vector.broadcast %cst_62 : f32 to vector<8x128xf32>
    %271 = arith.subf %270, %268 : vector<8x128xf32>
    %272 = math.exp %271 : vector<8x128xf32>
    %cst_63 = arith.constant 1.000000e+00 : f32
    %273 = vector.broadcast %cst_63 : f32 to vector<8x128xf32>
    %274 = arith.addf %273, %272 : vector<8x128xf32>
    %cst_64 = arith.constant 1.000000e+00 : f32
    %275 = vector.broadcast %cst_64 : f32 to vector<8x128xf32>
    %276 = arith.divf %275, %274 : vector<8x128xf32>
    %277 = arith.select %23, %269, %276 : vector<8x128xi1>, vector<8x128xf32>
    %278 = vector.extract_strided_slice %277 {offsets = [0, 0], sizes = [8, 32], strides = [1, 1]} : vector<8x128xf32> to vector<8x32xf32>
    %279 = vector.extract_strided_slice %277 {offsets = [0, 32], sizes = [8, 32], strides = [1, 1]} : vector<8x128xf32> to vector<8x32xf32>
    %280 = vector.extract_strided_slice %277 {offsets = [0, 64], sizes = [8, 32], strides = [1, 1]} : vector<8x128xf32> to vector<8x32xf32>
    %281 = vector.extract_strided_slice %277 {offsets = [0, 96], sizes = [8, 32], strides = [1, 1]} : vector<8x128xf32> to vector<8x32xf32>
    %282 = arith.mulf %279, %261 : vector<8x32xf32>
    %283 = arith.mulf %278, %280 : vector<8x32xf32>
    %284 = arith.addf %282, %283 : vector<8x32xf32>
    %285 = math.tanh %284 : vector<8x32xf32>
    %286 = arith.mulf %281, %285 : vector<8x32xf32>
    %287 = vector.extract_strided_slice %257 {offsets = [1, 0, 0], sizes = [1, 8, 128], strides = [1, 1, 1]} : vector<8x8x128xf32> to vector<1x8x128xf32>
    %288 = vector.shape_cast %287 : vector<1x8x128xf32> to vector<8x128xf32>
    %289 = vector.extract_strided_slice %257 {offsets = [6, 0, 0], sizes = [1, 8, 128], strides = [1, 1, 1]} : vector<8x8x128xf32> to vector<1x8x128xf32>
    %290 = vector.shape_cast %289 : vector<1x8x128xf32> to vector<8x128xf32>
    %291 = arith.select %18, %288, %290 : vector<8x128xi1>, vector<8x128xf32>
    %cst_65 = arith.constant dense<0.000000e+00> : vector<8x128xf32>
    %292 = tpu.matmul %286, %259, %cst_65 {dimension_numbers = #tpu.dot_dimension_numbers<[1], [0], [0], [1], [0, 0, 1, 1], [], []>} : vector<8x32xf32>, vector<32x128xf32>, vector<8x128xf32> -> vector<8x128xf32>
    %293 = arith.addf %291, %292 : vector<8x128xf32>
    %294 = math.tanh %293 : vector<8x128xf32>
    %cst_66 = arith.constant 0.000000e+00 : f32
    %295 = vector.broadcast %cst_66 : f32 to vector<8x128xf32>
    %296 = arith.subf %295, %293 : vector<8x128xf32>
    %297 = math.exp %296 : vector<8x128xf32>
    %cst_67 = arith.constant 1.000000e+00 : f32
    %298 = vector.broadcast %cst_67 : f32 to vector<8x128xf32>
    %299 = arith.addf %298, %297 : vector<8x128xf32>
    %cst_68 = arith.constant 1.000000e+00 : f32
    %300 = vector.broadcast %cst_68 : f32 to vector<8x128xf32>
    %301 = arith.divf %300, %299 : vector<8x128xf32>
    %302 = arith.select %23, %294, %301 : vector<8x128xi1>, vector<8x128xf32>
    %303 = vector.extract_strided_slice %302 {offsets = [0, 0], sizes = [8, 32], strides = [1, 1]} : vector<8x128xf32> to vector<8x32xf32>
    %304 = vector.extract_strided_slice %302 {offsets = [0, 32], sizes = [8, 32], strides = [1, 1]} : vector<8x128xf32> to vector<8x32xf32>
    %305 = vector.extract_strided_slice %302 {offsets = [0, 64], sizes = [8, 32], strides = [1, 1]} : vector<8x128xf32> to vector<8x32xf32>
    %306 = vector.extract_strided_slice %302 {offsets = [0, 96], sizes = [8, 32], strides = [1, 1]} : vector<8x128xf32> to vector<8x32xf32>
    %307 = arith.mulf %304, %284 : vector<8x32xf32>
    %308 = arith.mulf %303, %305 : vector<8x32xf32>
    %309 = arith.addf %307, %308 : vector<8x32xf32>
    %310 = math.tanh %309 : vector<8x32xf32>
    %311 = arith.mulf %306, %310 : vector<8x32xf32>
    %312 = vector.extract_strided_slice %257 {offsets = [2, 0, 0], sizes = [1, 8, 128], strides = [1, 1, 1]} : vector<8x8x128xf32> to vector<1x8x128xf32>
    %313 = vector.shape_cast %312 : vector<1x8x128xf32> to vector<8x128xf32>
    %314 = vector.extract_strided_slice %257 {offsets = [5, 0, 0], sizes = [1, 8, 128], strides = [1, 1, 1]} : vector<8x8x128xf32> to vector<1x8x128xf32>
    %315 = vector.shape_cast %314 : vector<1x8x128xf32> to vector<8x128xf32>
    %316 = arith.select %18, %313, %315 : vector<8x128xi1>, vector<8x128xf32>
    %cst_69 = arith.constant dense<0.000000e+00> : vector<8x128xf32>
    %317 = tpu.matmul %311, %259, %cst_69 {dimension_numbers = #tpu.dot_dimension_numbers<[1], [0], [0], [1], [0, 0, 1, 1], [], []>} : vector<8x32xf32>, vector<32x128xf32>, vector<8x128xf32> -> vector<8x128xf32>
    %318 = arith.addf %316, %317 : vector<8x128xf32>
    %319 = math.tanh %318 : vector<8x128xf32>
    %cst_70 = arith.constant 0.000000e+00 : f32
    %320 = vector.broadcast %cst_70 : f32 to vector<8x128xf32>
    %321 = arith.subf %320, %318 : vector<8x128xf32>
    %322 = math.exp %321 : vector<8x128xf32>
    %cst_71 = arith.constant 1.000000e+00 : f32
    %323 = vector.broadcast %cst_71 : f32 to vector<8x128xf32>
    %324 = arith.addf %323, %322 : vector<8x128xf32>
    %cst_72 = arith.constant 1.000000e+00 : f32
    %325 = vector.broadcast %cst_72 : f32 to vector<8x128xf32>
    %326 = arith.divf %325, %324 : vector<8x128xf32>
    %327 = arith.select %23, %319, %326 : vector<8x128xi1>, vector<8x128xf32>
    %328 = vector.extract_strided_slice %327 {offsets = [0, 0], sizes = [8, 32], strides = [1, 1]} : vector<8x128xf32> to vector<8x32xf32>
    %329 = vector.extract_strided_slice %327 {offsets = [0, 32], sizes = [8, 32], strides = [1, 1]} : vector<8x128xf32> to vector<8x32xf32>
    %330 = vector.extract_strided_slice %327 {offsets = [0, 64], sizes = [8, 32], strides = [1, 1]} : vector<8x128xf32> to vector<8x32xf32>
    %331 = vector.extract_strided_slice %327 {offsets = [0, 96], sizes = [8, 32], strides = [1, 1]} : vector<8x128xf32> to vector<8x32xf32>
    %332 = arith.mulf %329, %309 : vector<8x32xf32>
    %333 = arith.mulf %328, %330 : vector<8x32xf32>
    %334 = arith.addf %332, %333 : vector<8x32xf32>
    %335 = math.tanh %334 : vector<8x32xf32>
    %336 = arith.mulf %331, %335 : vector<8x32xf32>
    %337 = vector.extract_strided_slice %257 {offsets = [3, 0, 0], sizes = [1, 8, 128], strides = [1, 1, 1]} : vector<8x8x128xf32> to vector<1x8x128xf32>
    %338 = vector.shape_cast %337 : vector<1x8x128xf32> to vector<8x128xf32>
    %339 = vector.extract_strided_slice %257 {offsets = [4, 0, 0], sizes = [1, 8, 128], strides = [1, 1, 1]} : vector<8x8x128xf32> to vector<1x8x128xf32>
    %340 = vector.shape_cast %339 : vector<1x8x128xf32> to vector<8x128xf32>
    %341 = arith.select %18, %338, %340 : vector<8x128xi1>, vector<8x128xf32>
    %cst_73 = arith.constant dense<0.000000e+00> : vector<8x128xf32>
    %342 = tpu.matmul %336, %259, %cst_73 {dimension_numbers = #tpu.dot_dimension_numbers<[1], [0], [0], [1], [0, 0, 1, 1], [], []>} : vector<8x32xf32>, vector<32x128xf32>, vector<8x128xf32> -> vector<8x128xf32>
    %343 = arith.addf %341, %342 : vector<8x128xf32>
    %344 = math.tanh %343 : vector<8x128xf32>
    %cst_74 = arith.constant 0.000000e+00 : f32
    %345 = vector.broadcast %cst_74 : f32 to vector<8x128xf32>
    %346 = arith.subf %345, %343 : vector<8x128xf32>
    %347 = math.exp %346 : vector<8x128xf32>
    %cst_75 = arith.constant 1.000000e+00 : f32
    %348 = vector.broadcast %cst_75 : f32 to vector<8x128xf32>
    %349 = arith.addf %348, %347 : vector<8x128xf32>
    %cst_76 = arith.constant 1.000000e+00 : f32
    %350 = vector.broadcast %cst_76 : f32 to vector<8x128xf32>
    %351 = arith.divf %350, %349 : vector<8x128xf32>
    %352 = arith.select %23, %344, %351 : vector<8x128xi1>, vector<8x128xf32>
    %353 = vector.extract_strided_slice %352 {offsets = [0, 0], sizes = [8, 32], strides = [1, 1]} : vector<8x128xf32> to vector<8x32xf32>
    %354 = vector.extract_strided_slice %352 {offsets = [0, 32], sizes = [8, 32], strides = [1, 1]} : vector<8x128xf32> to vector<8x32xf32>
    %355 = vector.extract_strided_slice %352 {offsets = [0, 64], sizes = [8, 32], strides = [1, 1]} : vector<8x128xf32> to vector<8x32xf32>
    %356 = vector.extract_strided_slice %352 {offsets = [0, 96], sizes = [8, 32], strides = [1, 1]} : vector<8x128xf32> to vector<8x32xf32>
    %357 = arith.mulf %354, %334 : vector<8x32xf32>
    %358 = arith.mulf %353, %355 : vector<8x32xf32>
    %359 = arith.addf %357, %358 : vector<8x32xf32>
    %360 = math.tanh %359 : vector<8x32xf32>
    %361 = arith.mulf %356, %360 : vector<8x32xf32>
    %362 = vector.extract_strided_slice %257 {offsets = [4, 0, 0], sizes = [1, 8, 128], strides = [1, 1, 1]} : vector<8x8x128xf32> to vector<1x8x128xf32>
    %363 = vector.shape_cast %362 : vector<1x8x128xf32> to vector<8x128xf32>
    %364 = vector.extract_strided_slice %257 {offsets = [3, 0, 0], sizes = [1, 8, 128], strides = [1, 1, 1]} : vector<8x8x128xf32> to vector<1x8x128xf32>
    %365 = vector.shape_cast %364 : vector<1x8x128xf32> to vector<8x128xf32>
    %366 = arith.select %18, %363, %365 : vector<8x128xi1>, vector<8x128xf32>
    %cst_77 = arith.constant dense<0.000000e+00> : vector<8x128xf32>
    %367 = tpu.matmul %361, %259, %cst_77 {dimension_numbers = #tpu.dot_dimension_numbers<[1], [0], [0], [1], [0, 0, 1, 1], [], []>} : vector<8x32xf32>, vector<32x128xf32>, vector<8x128xf32> -> vector<8x128xf32>
    %368 = arith.addf %366, %367 : vector<8x128xf32>
    %369 = math.tanh %368 : vector<8x128xf32>
    %cst_78 = arith.constant 0.000000e+00 : f32
    %370 = vector.broadcast %cst_78 : f32 to vector<8x128xf32>
    %371 = arith.subf %370, %368 : vector<8x128xf32>
    %372 = math.exp %371 : vector<8x128xf32>
    %cst_79 = arith.constant 1.000000e+00 : f32
    %373 = vector.broadcast %cst_79 : f32 to vector<8x128xf32>
    %374 = arith.addf %373, %372 : vector<8x128xf32>
    %cst_80 = arith.constant 1.000000e+00 : f32
    %375 = vector.broadcast %cst_80 : f32 to vector<8x128xf32>
    %376 = arith.divf %375, %374 : vector<8x128xf32>
    %377 = arith.select %23, %369, %376 : vector<8x128xi1>, vector<8x128xf32>
    %378 = vector.extract_strided_slice %377 {offsets = [0, 0], sizes = [8, 32], strides = [1, 1]} : vector<8x128xf32> to vector<8x32xf32>
    %379 = vector.extract_strided_slice %377 {offsets = [0, 32], sizes = [8, 32], strides = [1, 1]} : vector<8x128xf32> to vector<8x32xf32>
    %380 = vector.extract_strided_slice %377 {offsets = [0, 64], sizes = [8, 32], strides = [1, 1]} : vector<8x128xf32> to vector<8x32xf32>
    %381 = vector.extract_strided_slice %377 {offsets = [0, 96], sizes = [8, 32], strides = [1, 1]} : vector<8x128xf32> to vector<8x32xf32>
    %382 = arith.mulf %379, %359 : vector<8x32xf32>
    %383 = arith.mulf %378, %380 : vector<8x32xf32>
    %384 = arith.addf %382, %383 : vector<8x32xf32>
    %385 = math.tanh %384 : vector<8x32xf32>
    %386 = arith.mulf %381, %385 : vector<8x32xf32>
    %387 = vector.extract_strided_slice %257 {offsets = [5, 0, 0], sizes = [1, 8, 128], strides = [1, 1, 1]} : vector<8x8x128xf32> to vector<1x8x128xf32>
    %388 = vector.shape_cast %387 : vector<1x8x128xf32> to vector<8x128xf32>
    %389 = vector.extract_strided_slice %257 {offsets = [2, 0, 0], sizes = [1, 8, 128], strides = [1, 1, 1]} : vector<8x8x128xf32> to vector<1x8x128xf32>
    %390 = vector.shape_cast %389 : vector<1x8x128xf32> to vector<8x128xf32>
    %391 = arith.select %18, %388, %390 : vector<8x128xi1>, vector<8x128xf32>
    %cst_81 = arith.constant dense<0.000000e+00> : vector<8x128xf32>
    %392 = tpu.matmul %386, %259, %cst_81 {dimension_numbers = #tpu.dot_dimension_numbers<[1], [0], [0], [1], [0, 0, 1, 1], [], []>} : vector<8x32xf32>, vector<32x128xf32>, vector<8x128xf32> -> vector<8x128xf32>
    %393 = arith.addf %391, %392 : vector<8x128xf32>
    %394 = math.tanh %393 : vector<8x128xf32>
    %cst_82 = arith.constant 0.000000e+00 : f32
    %395 = vector.broadcast %cst_82 : f32 to vector<8x128xf32>
    %396 = arith.subf %395, %393 : vector<8x128xf32>
    %397 = math.exp %396 : vector<8x128xf32>
    %cst_83 = arith.constant 1.000000e+00 : f32
    %398 = vector.broadcast %cst_83 : f32 to vector<8x128xf32>
    %399 = arith.addf %398, %397 : vector<8x128xf32>
    %cst_84 = arith.constant 1.000000e+00 : f32
    %400 = vector.broadcast %cst_84 : f32 to vector<8x128xf32>
    %401 = arith.divf %400, %399 : vector<8x128xf32>
    %402 = arith.select %23, %394, %401 : vector<8x128xi1>, vector<8x128xf32>
    %403 = vector.extract_strided_slice %402 {offsets = [0, 0], sizes = [8, 32], strides = [1, 1]} : vector<8x128xf32> to vector<8x32xf32>
    %404 = vector.extract_strided_slice %402 {offsets = [0, 32], sizes = [8, 32], strides = [1, 1]} : vector<8x128xf32> to vector<8x32xf32>
    %405 = vector.extract_strided_slice %402 {offsets = [0, 64], sizes = [8, 32], strides = [1, 1]} : vector<8x128xf32> to vector<8x32xf32>
    %406 = vector.extract_strided_slice %402 {offsets = [0, 96], sizes = [8, 32], strides = [1, 1]} : vector<8x128xf32> to vector<8x32xf32>
    %407 = arith.mulf %404, %384 : vector<8x32xf32>
    %408 = arith.mulf %403, %405 : vector<8x32xf32>
    %409 = arith.addf %407, %408 : vector<8x32xf32>
    %410 = math.tanh %409 : vector<8x32xf32>
    %411 = arith.mulf %406, %410 : vector<8x32xf32>
    %412 = vector.extract_strided_slice %257 {offsets = [6, 0, 0], sizes = [1, 8, 128], strides = [1, 1, 1]} : vector<8x8x128xf32> to vector<1x8x128xf32>
    %413 = vector.shape_cast %412 : vector<1x8x128xf32> to vector<8x128xf32>
    %414 = vector.extract_strided_slice %257 {offsets = [1, 0, 0], sizes = [1, 8, 128], strides = [1, 1, 1]} : vector<8x8x128xf32> to vector<1x8x128xf32>
    %415 = vector.shape_cast %414 : vector<1x8x128xf32> to vector<8x128xf32>
    %416 = arith.select %18, %413, %415 : vector<8x128xi1>, vector<8x128xf32>
    %cst_85 = arith.constant dense<0.000000e+00> : vector<8x128xf32>
    %417 = tpu.matmul %411, %259, %cst_85 {dimension_numbers = #tpu.dot_dimension_numbers<[1], [0], [0], [1], [0, 0, 1, 1], [], []>} : vector<8x32xf32>, vector<32x128xf32>, vector<8x128xf32> -> vector<8x128xf32>
    %418 = arith.addf %416, %417 : vector<8x128xf32>
    %419 = math.tanh %418 : vector<8x128xf32>
    %cst_86 = arith.constant 0.000000e+00 : f32
    %420 = vector.broadcast %cst_86 : f32 to vector<8x128xf32>
    %421 = arith.subf %420, %418 : vector<8x128xf32>
    %422 = math.exp %421 : vector<8x128xf32>
    %cst_87 = arith.constant 1.000000e+00 : f32
    %423 = vector.broadcast %cst_87 : f32 to vector<8x128xf32>
    %424 = arith.addf %423, %422 : vector<8x128xf32>
    %cst_88 = arith.constant 1.000000e+00 : f32
    %425 = vector.broadcast %cst_88 : f32 to vector<8x128xf32>
    %426 = arith.divf %425, %424 : vector<8x128xf32>
    %427 = arith.select %23, %419, %426 : vector<8x128xi1>, vector<8x128xf32>
    %428 = vector.extract_strided_slice %427 {offsets = [0, 0], sizes = [8, 32], strides = [1, 1]} : vector<8x128xf32> to vector<8x32xf32>
    %429 = vector.extract_strided_slice %427 {offsets = [0, 32], sizes = [8, 32], strides = [1, 1]} : vector<8x128xf32> to vector<8x32xf32>
    %430 = vector.extract_strided_slice %427 {offsets = [0, 64], sizes = [8, 32], strides = [1, 1]} : vector<8x128xf32> to vector<8x32xf32>
    %431 = vector.extract_strided_slice %427 {offsets = [0, 96], sizes = [8, 32], strides = [1, 1]} : vector<8x128xf32> to vector<8x32xf32>
    %432 = arith.mulf %429, %409 : vector<8x32xf32>
    %433 = arith.mulf %428, %430 : vector<8x32xf32>
    %434 = arith.addf %432, %433 : vector<8x32xf32>
    %435 = math.tanh %434 : vector<8x32xf32>
    %436 = arith.mulf %431, %435 : vector<8x32xf32>
    %437 = vector.extract_strided_slice %257 {offsets = [7, 0, 0], sizes = [1, 8, 128], strides = [1, 1, 1]} : vector<8x8x128xf32> to vector<1x8x128xf32>
    %438 = vector.shape_cast %437 : vector<1x8x128xf32> to vector<8x128xf32>
    %439 = vector.extract_strided_slice %257 {offsets = [0, 0, 0], sizes = [1, 8, 128], strides = [1, 1, 1]} : vector<8x8x128xf32> to vector<1x8x128xf32>
    %440 = vector.shape_cast %439 : vector<1x8x128xf32> to vector<8x128xf32>
    %441 = arith.select %18, %438, %440 : vector<8x128xi1>, vector<8x128xf32>
    %cst_89 = arith.constant dense<0.000000e+00> : vector<8x128xf32>
    %442 = tpu.matmul %436, %259, %cst_89 {dimension_numbers = #tpu.dot_dimension_numbers<[1], [0], [0], [1], [0, 0, 1, 1], [], []>} : vector<8x32xf32>, vector<32x128xf32>, vector<8x128xf32> -> vector<8x128xf32>
    %443 = arith.addf %441, %442 : vector<8x128xf32>
    %444 = math.tanh %443 : vector<8x128xf32>
    %cst_90 = arith.constant 0.000000e+00 : f32
    %445 = vector.broadcast %cst_90 : f32 to vector<8x128xf32>
    %446 = arith.subf %445, %443 : vector<8x128xf32>
    %447 = math.exp %446 : vector<8x128xf32>
    %cst_91 = arith.constant 1.000000e+00 : f32
    %448 = vector.broadcast %cst_91 : f32 to vector<8x128xf32>
    %449 = arith.addf %448, %447 : vector<8x128xf32>
    %cst_92 = arith.constant 1.000000e+00 : f32
    %450 = vector.broadcast %cst_92 : f32 to vector<8x128xf32>
    %451 = arith.divf %450, %449 : vector<8x128xf32>
    %452 = arith.select %23, %444, %451 : vector<8x128xi1>, vector<8x128xf32>
    %453 = vector.extract_strided_slice %452 {offsets = [0, 0], sizes = [8, 32], strides = [1, 1]} : vector<8x128xf32> to vector<8x32xf32>
    %454 = vector.extract_strided_slice %452 {offsets = [0, 32], sizes = [8, 32], strides = [1, 1]} : vector<8x128xf32> to vector<8x32xf32>
    %455 = vector.extract_strided_slice %452 {offsets = [0, 64], sizes = [8, 32], strides = [1, 1]} : vector<8x128xf32> to vector<8x32xf32>
    %456 = vector.extract_strided_slice %452 {offsets = [0, 96], sizes = [8, 32], strides = [1, 1]} : vector<8x128xf32> to vector<8x32xf32>
    %457 = arith.mulf %454, %434 : vector<8x32xf32>
    %458 = arith.mulf %453, %455 : vector<8x32xf32>
    %459 = arith.addf %457, %458 : vector<8x32xf32>
    %460 = math.tanh %459 : vector<8x32xf32>
    %461 = arith.mulf %456, %460 : vector<8x32xf32>
    %462 = arith.select %26, %286, %461 : vector<8x32xi1>, vector<8x32xf32>
    %463 = arith.select %26, %311, %436 : vector<8x32xi1>, vector<8x32xf32>
    %464 = arith.select %26, %336, %411 : vector<8x32xi1>, vector<8x32xf32>
    %465 = arith.select %26, %361, %386 : vector<8x32xi1>, vector<8x32xf32>
    %466 = arith.select %26, %386, %361 : vector<8x32xi1>, vector<8x32xf32>
    %467 = arith.select %26, %411, %336 : vector<8x32xi1>, vector<8x32xf32>
    %468 = arith.select %26, %436, %311 : vector<8x32xi1>, vector<8x32xf32>
    %469 = arith.select %26, %461, %286 : vector<8x32xi1>, vector<8x32xf32>
    %c0_93 = arith.constant 0 : index
    %c0_94 = arith.constant 0 : index
    %c0_95 = arith.constant 0 : index
    %470 = vector.load %arg8[%c0_93, %c0_94, %c0_95] : memref<1x1x32xf32, #tpu.memory_space<vmem>>, vector<1x1x32xf32>
    %471 = vector.shape_cast %470 : vector<1x1x32xf32> to vector<1x32xf32>
    %c0_96 = arith.constant 0 : index
    %c0_97 = arith.constant 0 : index
    %c0_98 = arith.constant 0 : index
    %472 = vector.load %arg9[%c0_96, %c0_97, %c0_98] : memref<1x1x32xf32, #tpu.memory_space<vmem>>, vector<1x1x32xf32>
    %473 = vector.shape_cast %472 : vector<1x1x32xf32> to vector<1x32xf32>
    %cst_99 = arith.constant dense<0.000000e+00> : vector<8xf32>
    %474 = vector.multi_reduction <add>, %462, %cst_99 [1] : vector<8x32xf32> to vector<8xf32>
    %475 = vector.shape_cast %474 : vector<8xf32> to vector<8x1xf32>
    %cst_100 = arith.constant 3.200000e+01 : f32
    %476 = vector.broadcast %cst_100 : f32 to vector<8x1xf32>
    %477 = arith.divf %475, %476 : vector<8x1xf32>
    %478 = vector.broadcast %477 : vector<8x1xf32> to vector<8x32xf32>
    %479 = arith.subf %462, %478 : vector<8x32xf32>
    %480 = arith.mulf %479, %479 : vector<8x32xf32>
    %cst_101 = arith.constant dense<0.000000e+00> : vector<8xf32>
    %481 = vector.multi_reduction <add>, %480, %cst_101 [1] : vector<8x32xf32> to vector<8xf32>
    %482 = vector.shape_cast %481 : vector<8xf32> to vector<8x1xf32>
    %cst_102 = arith.constant 3.200000e+01 : f32
    %483 = vector.broadcast %cst_102 : f32 to vector<8x1xf32>
    %484 = arith.divf %482, %483 : vector<8x1xf32>
    %485 = vector.broadcast %477 : vector<8x1xf32> to vector<8x32xf32>
    %486 = arith.subf %462, %485 : vector<8x32xf32>
    %cst_103 = arith.constant 9.99999974E-6 : f32
    %487 = vector.broadcast %cst_103 : f32 to vector<8x1xf32>
    %488 = arith.addf %484, %487 : vector<8x1xf32>
    %489 = math.rsqrt %488 : vector<8x1xf32>
    %490 = vector.broadcast %489 : vector<8x1xf32> to vector<8x32xf32>
    %491 = arith.mulf %486, %490 : vector<8x32xf32>
    %492 = vector.broadcast %471 : vector<1x32xf32> to vector<8x32xf32>
    %493 = arith.mulf %491, %492 : vector<8x32xf32>
    %494 = vector.broadcast %473 : vector<1x32xf32> to vector<8x32xf32>
    %495 = arith.addf %493, %494 : vector<8x32xf32>
    %c0_104 = arith.constant 0 : index
    %c0_105 = arith.constant 0 : index
    %c0_106 = arith.constant 0 : index
    %496 = vector.load %arg10[%c0_104, %c0_105, %c0_106] : memref<1x8x256xf32, #tpu.memory_space<vmem>>, vector<1x8x32xf32>
    %497 = vector.shape_cast %496 : vector<1x8x32xf32> to vector<8x32xf32>
    %498 = vector.shape_cast %495 : vector<8x32xf32> to vector<1x8x32xf32>
    tpu.vector_store %arg10[%c0_104, %c0_105, %c0_106], %498 {strides = array<i32>} : memref<1x8x256xf32, #tpu.memory_space<vmem>>, vector<1x8x32xf32>,
    %cst_107 = arith.constant dense<0.000000e+00> : vector<8xf32>
    %499 = vector.multi_reduction <add>, %463, %cst_107 [1] : vector<8x32xf32> to vector<8xf32>
    %500 = vector.shape_cast %499 : vector<8xf32> to vector<8x1xf32>
    %cst_108 = arith.constant 3.200000e+01 : f32
    %501 = vector.broadcast %cst_108 : f32 to vector<8x1xf32>
    %502 = arith.divf %500, %501 : vector<8x1xf32>
    %503 = vector.broadcast %502 : vector<8x1xf32> to vector<8x32xf32>
    %504 = arith.subf %463, %503 : vector<8x32xf32>
    %505 = arith.mulf %504, %504 : vector<8x32xf32>
    %cst_109 = arith.constant dense<0.000000e+00> : vector<8xf32>
    %506 = vector.multi_reduction <add>, %505, %cst_109 [1] : vector<8x32xf32> to vector<8xf32>
    %507 = vector.shape_cast %506 : vector<8xf32> to vector<8x1xf32>
    %cst_110 = arith.constant 3.200000e+01 : f32
    %508 = vector.broadcast %cst_110 : f32 to vector<8x1xf32>
    %509 = arith.divf %507, %508 : vector<8x1xf32>
    %510 = vector.broadcast %502 : vector<8x1xf32> to vector<8x32xf32>
    %511 = arith.subf %463, %510 : vector<8x32xf32>
    %cst_111 = arith.constant 9.99999974E-6 : f32
    %512 = vector.broadcast %cst_111 : f32 to vector<8x1xf32>
    %513 = arith.addf %509, %512 : vector<8x1xf32>
    %514 = math.rsqrt %513 : vector<8x1xf32>
    %515 = vector.broadcast %514 : vector<8x1xf32> to vector<8x32xf32>
    %516 = arith.mulf %511, %515 : vector<8x32xf32>
    %517 = vector.broadcast %471 : vector<1x32xf32> to vector<8x32xf32>
    %518 = arith.mulf %516, %517 : vector<8x32xf32>
    %519 = vector.broadcast %473 : vector<1x32xf32> to vector<8x32xf32>
    %520 = arith.addf %518, %519 : vector<8x32xf32>
    %c0_112 = arith.constant 0 : index
    %c0_113 = arith.constant 0 : index
    %c32 = arith.constant 32 : index
    %521 = vector.load %arg10[%c0_112, %c0_113, %c32] : memref<1x8x256xf32, #tpu.memory_space<vmem>>, vector<1x8x32xf32>
    %522 = vector.shape_cast %521 : vector<1x8x32xf32> to vector<8x32xf32>
    %523 = vector.shape_cast %520 : vector<8x32xf32> to vector<1x8x32xf32>
    tpu.vector_store %arg10[%c0_112, %c0_113, %c32], %523 {strides = array<i32>} : memref<1x8x256xf32, #tpu.memory_space<vmem>>, vector<1x8x32xf32>,
    %cst_114 = arith.constant dense<0.000000e+00> : vector<8xf32>
    %524 = vector.multi_reduction <add>, %464, %cst_114 [1] : vector<8x32xf32> to vector<8xf32>
    %525 = vector.shape_cast %524 : vector<8xf32> to vector<8x1xf32>
    %cst_115 = arith.constant 3.200000e+01 : f32
    %526 = vector.broadcast %cst_115 : f32 to vector<8x1xf32>
    %527 = arith.divf %525, %526 : vector<8x1xf32>
    %528 = vector.broadcast %527 : vector<8x1xf32> to vector<8x32xf32>
    %529 = arith.subf %464, %528 : vector<8x32xf32>
    %530 = arith.mulf %529, %529 : vector<8x32xf32>
    %cst_116 = arith.constant dense<0.000000e+00> : vector<8xf32>
    %531 = vector.multi_reduction <add>, %530, %cst_116 [1] : vector<8x32xf32> to vector<8xf32>
    %532 = vector.shape_cast %531 : vector<8xf32> to vector<8x1xf32>
    %cst_117 = arith.constant 3.200000e+01 : f32
    %533 = vector.broadcast %cst_117 : f32 to vector<8x1xf32>
    %534 = arith.divf %532, %533 : vector<8x1xf32>
    %535 = vector.broadcast %527 : vector<8x1xf32> to vector<8x32xf32>
    %536 = arith.subf %464, %535 : vector<8x32xf32>
    %cst_118 = arith.constant 9.99999974E-6 : f32
    %537 = vector.broadcast %cst_118 : f32 to vector<8x1xf32>
    %538 = arith.addf %534, %537 : vector<8x1xf32>
    %539 = math.rsqrt %538 : vector<8x1xf32>
    %540 = vector.broadcast %539 : vector<8x1xf32> to vector<8x32xf32>
    %541 = arith.mulf %536, %540 : vector<8x32xf32>
    %542 = vector.broadcast %471 : vector<1x32xf32> to vector<8x32xf32>
    %543 = arith.mulf %541, %542 : vector<8x32xf32>
    %544 = vector.broadcast %473 : vector<1x32xf32> to vector<8x32xf32>
    %545 = arith.addf %543, %544 : vector<8x32xf32>
    %c0_119 = arith.constant 0 : index
    %c0_120 = arith.constant 0 : index
    %c64 = arith.constant 64 : index
    %546 = vector.load %arg10[%c0_119, %c0_120, %c64] : memref<1x8x256xf32, #tpu.memory_space<vmem>>, vector<1x8x32xf32>
    %547 = vector.shape_cast %546 : vector<1x8x32xf32> to vector<8x32xf32>
    %548 = vector.shape_cast %545 : vector<8x32xf32> to vector<1x8x32xf32>
    tpu.vector_store %arg10[%c0_119, %c0_120, %c64], %548 {strides = array<i32>} : memref<1x8x256xf32, #tpu.memory_space<vmem>>, vector<1x8x32xf32>,
    %cst_121 = arith.constant dense<0.000000e+00> : vector<8xf32>
    %549 = vector.multi_reduction <add>, %465, %cst_121 [1] : vector<8x32xf32> to vector<8xf32>
    %550 = vector.shape_cast %549 : vector<8xf32> to vector<8x1xf32>
    %cst_122 = arith.constant 3.200000e+01 : f32
    %551 = vector.broadcast %cst_122 : f32 to vector<8x1xf32>
    %552 = arith.divf %550, %551 : vector<8x1xf32>
    %553 = vector.broadcast %552 : vector<8x1xf32> to vector<8x32xf32>
    %554 = arith.subf %465, %553 : vector<8x32xf32>
    %555 = arith.mulf %554, %554 : vector<8x32xf32>
    %cst_123 = arith.constant dense<0.000000e+00> : vector<8xf32>
    %556 = vector.multi_reduction <add>, %555, %cst_123 [1] : vector<8x32xf32> to vector<8xf32>
    %557 = vector.shape_cast %556 : vector<8xf32> to vector<8x1xf32>
    %cst_124 = arith.constant 3.200000e+01 : f32
    %558 = vector.broadcast %cst_124 : f32 to vector<8x1xf32>
    %559 = arith.divf %557, %558 : vector<8x1xf32>
    %560 = vector.broadcast %552 : vector<8x1xf32> to vector<8x32xf32>
    %561 = arith.subf %465, %560 : vector<8x32xf32>
    %cst_125 = arith.constant 9.99999974E-6 : f32
    %562 = vector.broadcast %cst_125 : f32 to vector<8x1xf32>
    %563 = arith.addf %559, %562 : vector<8x1xf32>
    %564 = math.rsqrt %563 : vector<8x1xf32>
    %565 = vector.broadcast %564 : vector<8x1xf32> to vector<8x32xf32>
    %566 = arith.mulf %561, %565 : vector<8x32xf32>
    %567 = vector.broadcast %471 : vector<1x32xf32> to vector<8x32xf32>
    %568 = arith.mulf %566, %567 : vector<8x32xf32>
    %569 = vector.broadcast %473 : vector<1x32xf32> to vector<8x32xf32>
    %570 = arith.addf %568, %569 : vector<8x32xf32>
    %c0_126 = arith.constant 0 : index
    %c0_127 = arith.constant 0 : index
    %c96 = arith.constant 96 : index
    %571 = vector.load %arg10[%c0_126, %c0_127, %c96] : memref<1x8x256xf32, #tpu.memory_space<vmem>>, vector<1x8x32xf32>
    %572 = vector.shape_cast %571 : vector<1x8x32xf32> to vector<8x32xf32>
    %573 = vector.shape_cast %570 : vector<8x32xf32> to vector<1x8x32xf32>
    tpu.vector_store %arg10[%c0_126, %c0_127, %c96], %573 {strides = array<i32>} : memref<1x8x256xf32, #tpu.memory_space<vmem>>, vector<1x8x32xf32>,
    %cst_128 = arith.constant dense<0.000000e+00> : vector<8xf32>
    %574 = vector.multi_reduction <add>, %466, %cst_128 [1] : vector<8x32xf32> to vector<8xf32>
    %575 = vector.shape_cast %574 : vector<8xf32> to vector<8x1xf32>
    %cst_129 = arith.constant 3.200000e+01 : f32
    %576 = vector.broadcast %cst_129 : f32 to vector<8x1xf32>
    %577 = arith.divf %575, %576 : vector<8x1xf32>
    %578 = vector.broadcast %577 : vector<8x1xf32> to vector<8x32xf32>
    %579 = arith.subf %466, %578 : vector<8x32xf32>
    %580 = arith.mulf %579, %579 : vector<8x32xf32>
    %cst_130 = arith.constant dense<0.000000e+00> : vector<8xf32>
    %581 = vector.multi_reduction <add>, %580, %cst_130 [1] : vector<8x32xf32> to vector<8xf32>
    %582 = vector.shape_cast %581 : vector<8xf32> to vector<8x1xf32>
    %cst_131 = arith.constant 3.200000e+01 : f32
    %583 = vector.broadcast %cst_131 : f32 to vector<8x1xf32>
    %584 = arith.divf %582, %583 : vector<8x1xf32>
    %585 = vector.broadcast %577 : vector<8x1xf32> to vector<8x32xf32>
    %586 = arith.subf %466, %585 : vector<8x32xf32>
    %cst_132 = arith.constant 9.99999974E-6 : f32
    %587 = vector.broadcast %cst_132 : f32 to vector<8x1xf32>
    %588 = arith.addf %584, %587 : vector<8x1xf32>
    %589 = math.rsqrt %588 : vector<8x1xf32>
    %590 = vector.broadcast %589 : vector<8x1xf32> to vector<8x32xf32>
    %591 = arith.mulf %586, %590 : vector<8x32xf32>
    %592 = vector.broadcast %471 : vector<1x32xf32> to vector<8x32xf32>
    %593 = arith.mulf %591, %592 : vector<8x32xf32>
    %594 = vector.broadcast %473 : vector<1x32xf32> to vector<8x32xf32>
    %595 = arith.addf %593, %594 : vector<8x32xf32>
    %c0_133 = arith.constant 0 : index
    %c0_134 = arith.constant 0 : index
    %c128 = arith.constant 128 : index
    %596 = vector.load %arg10[%c0_133, %c0_134, %c128] : memref<1x8x256xf32, #tpu.memory_space<vmem>>, vector<1x8x32xf32>
    %597 = vector.shape_cast %596 : vector<1x8x32xf32> to vector<8x32xf32>
    %598 = vector.shape_cast %595 : vector<8x32xf32> to vector<1x8x32xf32>
    tpu.vector_store %arg10[%c0_133, %c0_134, %c128], %598 {strides = array<i32>} : memref<1x8x256xf32, #tpu.memory_space<vmem>>, vector<1x8x32xf32>,
    %cst_135 = arith.constant dense<0.000000e+00> : vector<8xf32>
    %599 = vector.multi_reduction <add>, %467, %cst_135 [1] : vector<8x32xf32> to vector<8xf32>
    %600 = vector.shape_cast %599 : vector<8xf32> to vector<8x1xf32>
    %cst_136 = arith.constant 3.200000e+01 : f32
    %601 = vector.broadcast %cst_136 : f32 to vector<8x1xf32>
    %602 = arith.divf %600, %601 : vector<8x1xf32>
    %603 = vector.broadcast %602 : vector<8x1xf32> to vector<8x32xf32>
    %604 = arith.subf %467, %603 : vector<8x32xf32>
    %605 = arith.mulf %604, %604 : vector<8x32xf32>
    %cst_137 = arith.constant dense<0.000000e+00> : vector<8xf32>
    %606 = vector.multi_reduction <add>, %605, %cst_137 [1] : vector<8x32xf32> to vector<8xf32>
    %607 = vector.shape_cast %606 : vector<8xf32> to vector<8x1xf32>
    %cst_138 = arith.constant 3.200000e+01 : f32
    %608 = vector.broadcast %cst_138 : f32 to vector<8x1xf32>
    %609 = arith.divf %607, %608 : vector<8x1xf32>
    %610 = vector.broadcast %602 : vector<8x1xf32> to vector<8x32xf32>
    %611 = arith.subf %467, %610 : vector<8x32xf32>
    %cst_139 = arith.constant 9.99999974E-6 : f32
    %612 = vector.broadcast %cst_139 : f32 to vector<8x1xf32>
    %613 = arith.addf %609, %612 : vector<8x1xf32>
    %614 = math.rsqrt %613 : vector<8x1xf32>
    %615 = vector.broadcast %614 : vector<8x1xf32> to vector<8x32xf32>
    %616 = arith.mulf %611, %615 : vector<8x32xf32>
    %617 = vector.broadcast %471 : vector<1x32xf32> to vector<8x32xf32>
    %618 = arith.mulf %616, %617 : vector<8x32xf32>
    %619 = vector.broadcast %473 : vector<1x32xf32> to vector<8x32xf32>
    %620 = arith.addf %618, %619 : vector<8x32xf32>
    %c0_140 = arith.constant 0 : index
    %c0_141 = arith.constant 0 : index
    %c160 = arith.constant 160 : index
    %621 = vector.load %arg10[%c0_140, %c0_141, %c160] : memref<1x8x256xf32, #tpu.memory_space<vmem>>, vector<1x8x32xf32>
    %622 = vector.shape_cast %621 : vector<1x8x32xf32> to vector<8x32xf32>
    %623 = vector.shape_cast %620 : vector<8x32xf32> to vector<1x8x32xf32>
    tpu.vector_store %arg10[%c0_140, %c0_141, %c160], %623 {strides = array<i32>} : memref<1x8x256xf32, #tpu.memory_space<vmem>>, vector<1x8x32xf32>,
    %cst_142 = arith.constant dense<0.000000e+00> : vector<8xf32>
    %624 = vector.multi_reduction <add>, %468, %cst_142 [1] : vector<8x32xf32> to vector<8xf32>
    %625 = vector.shape_cast %624 : vector<8xf32> to vector<8x1xf32>
    %cst_143 = arith.constant 3.200000e+01 : f32
    %626 = vector.broadcast %cst_143 : f32 to vector<8x1xf32>
    %627 = arith.divf %625, %626 : vector<8x1xf32>
    %628 = vector.broadcast %627 : vector<8x1xf32> to vector<8x32xf32>
    %629 = arith.subf %468, %628 : vector<8x32xf32>
    %630 = arith.mulf %629, %629 : vector<8x32xf32>
    %cst_144 = arith.constant dense<0.000000e+00> : vector<8xf32>
    %631 = vector.multi_reduction <add>, %630, %cst_144 [1] : vector<8x32xf32> to vector<8xf32>
    %632 = vector.shape_cast %631 : vector<8xf32> to vector<8x1xf32>
    %cst_145 = arith.constant 3.200000e+01 : f32
    %633 = vector.broadcast %cst_145 : f32 to vector<8x1xf32>
    %634 = arith.divf %632, %633 : vector<8x1xf32>
    %635 = vector.broadcast %627 : vector<8x1xf32> to vector<8x32xf32>
    %636 = arith.subf %468, %635 : vector<8x32xf32>
    %cst_146 = arith.constant 9.99999974E-6 : f32
    %637 = vector.broadcast %cst_146 : f32 to vector<8x1xf32>
    %638 = arith.addf %634, %637 : vector<8x1xf32>
    %639 = math.rsqrt %638 : vector<8x1xf32>
    %640 = vector.broadcast %639 : vector<8x1xf32> to vector<8x32xf32>
    %641 = arith.mulf %636, %640 : vector<8x32xf32>
    %642 = vector.broadcast %471 : vector<1x32xf32> to vector<8x32xf32>
    %643 = arith.mulf %641, %642 : vector<8x32xf32>
    %644 = vector.broadcast %473 : vector<1x32xf32> to vector<8x32xf32>
    %645 = arith.addf %643, %644 : vector<8x32xf32>
    %c0_147 = arith.constant 0 : index
    %c0_148 = arith.constant 0 : index
    %c192 = arith.constant 192 : index
    %646 = vector.load %arg10[%c0_147, %c0_148, %c192] : memref<1x8x256xf32, #tpu.memory_space<vmem>>, vector<1x8x32xf32>
    %647 = vector.shape_cast %646 : vector<1x8x32xf32> to vector<8x32xf32>
    %648 = vector.shape_cast %645 : vector<8x32xf32> to vector<1x8x32xf32>
    tpu.vector_store %arg10[%c0_147, %c0_148, %c192], %648 {strides = array<i32>} : memref<1x8x256xf32, #tpu.memory_space<vmem>>, vector<1x8x32xf32>,
    %cst_149 = arith.constant dense<0.000000e+00> : vector<8xf32>
    %649 = vector.multi_reduction <add>, %469, %cst_149 [1] : vector<8x32xf32> to vector<8xf32>
    %650 = vector.shape_cast %649 : vector<8xf32> to vector<8x1xf32>
    %cst_150 = arith.constant 3.200000e+01 : f32
    %651 = vector.broadcast %cst_150 : f32 to vector<8x1xf32>
    %652 = arith.divf %650, %651 : vector<8x1xf32>
    %653 = vector.broadcast %652 : vector<8x1xf32> to vector<8x32xf32>
    %654 = arith.subf %469, %653 : vector<8x32xf32>
    %655 = arith.mulf %654, %654 : vector<8x32xf32>
    %cst_151 = arith.constant dense<0.000000e+00> : vector<8xf32>
    %656 = vector.multi_reduction <add>, %655, %cst_151 [1] : vector<8x32xf32> to vector<8xf32>
    %657 = vector.shape_cast %656 : vector<8xf32> to vector<8x1xf32>
    %cst_152 = arith.constant 3.200000e+01 : f32
    %658 = vector.broadcast %cst_152 : f32 to vector<8x1xf32>
    %659 = arith.divf %657, %658 : vector<8x1xf32>
    %660 = vector.broadcast %652 : vector<8x1xf32> to vector<8x32xf32>
    %661 = arith.subf %469, %660 : vector<8x32xf32>
    %cst_153 = arith.constant 9.99999974E-6 : f32
    %662 = vector.broadcast %cst_153 : f32 to vector<8x1xf32>
    %663 = arith.addf %659, %662 : vector<8x1xf32>
    %664 = math.rsqrt %663 : vector<8x1xf32>
    %665 = vector.broadcast %664 : vector<8x1xf32> to vector<8x32xf32>
    %666 = arith.mulf %661, %665 : vector<8x32xf32>
    %667 = vector.broadcast %471 : vector<1x32xf32> to vector<8x32xf32>
    %668 = arith.mulf %666, %667 : vector<8x32xf32>
    %669 = vector.broadcast %473 : vector<1x32xf32> to vector<8x32xf32>
    %670 = arith.addf %668, %669 : vector<8x32xf32>
    %c0_154 = arith.constant 0 : index
    %c0_155 = arith.constant 0 : index
    %c224 = arith.constant 224 : index
    %671 = vector.load %arg10[%c0_154, %c0_155, %c224] : memref<1x8x256xf32, #tpu.memory_space<vmem>>, vector<1x8x32xf32>
    %672 = vector.shape_cast %671 : vector<1x8x32xf32> to vector<8x32xf32>
    %673 = vector.shape_cast %670 : vector<8x32xf32> to vector<1x8x32xf32>
    tpu.vector_store %arg10[%c0_154, %c0_155, %c224], %673 {strides = array<i32>} : memref<1x8x256xf32, #tpu.memory_space<vmem>>, vector<1x8x32xf32>,
    return
  }
  func.func @transform_0(%arg0: i32) -> (i32, i32, i32) {
    %c0_i32 = arith.constant 0 : i32
    %c0_i32_0 = arith.constant 0 : i32
    %c0_i32_1 = arith.constant 0 : i32
    return %arg0, %c0_i32, %c0_i32_0 : i32, i32, i32
  }
  func.func @transform_1(%arg0: i32) -> (i32, i32, i32) {
    %c0_i32 = arith.constant 0 : i32
    %c0_i32_0 = arith.constant 0 : i32
    %c0_i32_1 = arith.constant 0 : i32
    return %arg0, %c0_i32, %c0_i32_0 : i32, i32, i32
  }
  func.func @transform_2(%arg0: i32) -> (i32, i32, i32) {
    %c0_i32 = arith.constant 0 : i32
    %c0_i32_0 = arith.constant 0 : i32
    %c0_i32_1 = arith.constant 0 : i32
    return %arg0, %c0_i32, %c0_i32_0 : i32, i32, i32
  }
  func.func @transform_3(%arg0: i32) -> (i32, i32, i32) {
    %c0_i32 = arith.constant 0 : i32
    %c0_i32_0 = arith.constant 0 : i32
    %c0_i32_1 = arith.constant 0 : i32
    return %arg0, %c0_i32, %c0_i32_0 : i32, i32, i32
  }
  func.func @transform_4(%arg0: i32) -> (i32, i32, i32) {
    %c0_i32 = arith.constant 0 : i32
    %c0_i32_0 = arith.constant 0 : i32
    %c0_i32_1 = arith.constant 0 : i32
    return %arg0, %c0_i32, %c0_i32_0 : i32, i32, i32
  }
  func.func @transform_5(%arg0: i32) -> (i32, i32, i32) {
    %c0_i32 = arith.constant 0 : i32
    %c0_i32_0 = arith.constant 0 : i32
    %c0_i32_1 = arith.constant 0 : i32
    return %arg0, %c0_i32, %c0_i32_0 : i32, i32, i32
  }
  func.func @transform_6(%arg0: i32) -> (i32, i32, i32) {
    %c0_i32 = arith.constant 0 : i32
    %c0_i32_0 = arith.constant 0 : i32
    %c0_i32_1 = arith.constant 0 : i32
    return %arg0, %c0_i32, %c0_i32_0 : i32, i32, i32
  }
  func.func @transform_7(%arg0: i32) -> (i32, i32, i32) {
    %c0_i32 = arith.constant 0 : i32
    %c0_i32_0 = arith.constant 0 : i32
    %c0_i32_1 = arith.constant 0 : i32
    return %arg0, %c0_i32, %c0_i32_0 : i32, i32, i32
  }
  func.func @transform_8(%arg0: i32) -> (i32, i32, i32) {
    %c0_i32 = arith.constant 0 : i32
    %c0_i32_0 = arith.constant 0 : i32
    %c0_i32_1 = arith.constant 0 : i32
    return %arg0, %c0_i32, %c0_i32_0 : i32, i32, i32
  }
  func.func @transform_9(%arg0: i32) -> (i32, i32, i32) {
    %c0_i32 = arith.constant 0 : i32
    %c0_i32_0 = arith.constant 0 : i32
    %c0_i32_1 = arith.constant 0 : i32
    return %arg0, %c0_i32, %c0_i32_0 : i32, i32, i32
  }
}

</mosaic_0001>

<bundles_post_ra>
// kernel: tpu_custom_call.1
= control target key start
LH: loop header
LB: loop body
LE: loop exit
PB: predicated region body
PF: predicated region fallthrough
CT: control target
= control target key end

     0   :  { %s4417_s0 = inlined_call_operand.vmem [shape: f32[3,64,16], index: 0, kind: input, shape index: {}]   ;;  %s4418_s1 = inlined_call_operand.vmem [shape: f32[3,16,128], index: 1, kind: input, shape index: {}]   ;;  %s4419_s2 = inlined_call_operand.vmem [shape: f32[3,32,128], index: 2, kind: input, shape index: {}]   ;;  %s4420_s3 = inlined_call_operand.vmem [shape: f32[3,1,128], index: 3, kind: input, shape index: {}]   ;;  %s4421_s4 = inlined_call_operand.vmem [shape: f32[3,32,128], index: 4, kind: input, shape index: {}]   ;;  %s4422_s5 = inlined_call_operand.hbm [shape: f32[3,32,128], index: 5, kind: input, shape index: {}]   ;;  %s4423_s6 = inlined_call_operand.vmem [shape: f32[3,1,128], index: 6, kind: input, shape index: {}]   ;;  %s4424_s7 = inlined_call_operand.vmem [shape: f32[3,1,32], index: 7, kind: input, shape index: {}]   ;;  %s4425_s8 = inlined_call_operand.vmem [shape: f32[3,1,32], index: 8, kind: input, shape index: {}]   ;;  %s4426_s9 = inlined_call_operand.hbm [shape: f32[3,8,256], index: 9, kind: output, shape index: {}]  }
   0x1   :  { %4429 = sst [smem:[#allocation10_spill]] %s4422_s5 }
   0x2   :  { %14 = vsyncpa [#allocation3], 0 }
   0x3   :  { %16 = vsyncpa [#allocation3 + $0x1], 0 }
   0x4   :  { %17 = vsyncpa [#allocation4], 0 }
   0x5   :  { %19 = vsyncpa [#allocation4 + $0x1], 0  ;;  %s3644_s30 = smov 0   ;;  %s3646_s10 = smov 0  }
   0x6   :  { %s3648_s11 = smov 0   ;;  %s3650_s12 = smov 0  }
   0x7 LB: > { %4430 = sst [smem:[#allocation8_spill]] %s3578_s11  ;;  %s3665_s13 = sadd.s32 4294967295, %s3582_s12   ;;  %s3582_s12 = sphi %s3650_s12, %s4448_s12   ;;  %s3578_s11 = sphi %s3648_s11, %s4445_s11   ;;  %s3574_s10 = sphi %s3646_s10, %s4447_s10   ;;  %s3570_s30 = sphi %s3644_s30, %s4446_s30  }
   0x8   : > { %s2804_s14 = sadd.s32 4294967294, %s3582_s12   ;;  %s3669_s15 = sadd.s32 1, %s3582_s12  }
   0x9   : > { %s162_s16 = sadd.s32 1, %s3578_s11  ;;  %s159_s17 = ssub.s32 %s3582_s12, %s3669_s15 }
   0xa   : > { %p169_p0 = scmp.ne.s32.totalorder %s3578_s11, %s3574_s10  ;;  %p160_p1 = scmp.eq.s32.totalorder %s159_s17, 0 }
   0xb   : > { %p170_p2 = scmp.eq.s32.totalorder %s3582_s12, 0  ;;  %p175_p3 = scmp.ne.s32.totalorder %s3574_s10, %s3570_s30 }
   0xc   : > { %p176_p4 = scmp.eq.s32.totalorder %s3665_s13, 0  ;;  %p277_p7 = scmp.eq.s32.totalorder %s3665_s13, 2 }
   0xd   : > { %s3681_s18 = scalar_select %p160_p1, %s3578_s11, %s162_s16  }
   0xe   : > { %p3683_p5 = por %p170_p2, %p169_p0  ;;  %p3687_p6 = por %p176_p4, %p175_p3 }
   0xf   : > { %4431 = sst [smem:[#allocation9_spill]] %s3681_s18  ;;  %p283_p8 = scmp.eq.s32.totalorder %s2804_s14, 2 }
  0x10   : > { %p3300_p9 = scmp.lt.s32.totalorder %s3582_s12, 3  ;;  %p3693_p10 = por %p277_p7, %p169_p0 }
  0x11   : > { %p3697_p11 = por %p283_p8, %p175_p3  ;;  %s341_s23 = sand.u32 1, %s3578_s11  }
  0x12   : > { %s4434_s21 = scalar_select %p3693_p10, 1, 0 }
  0x13   : > { %s4435_s22 = scalar_select %p3697_p11, 1, 0 }
  0x14   : > { %s2860_s24 = sshll.u32 %s3582_s12, 9  ;;  %s2807_s25 = sshll.u32 %s341_s23, 5 }
  0x15   : > { %s4436_s5 = sld [smem:[#allocation10_spill]]  ;;  %s345_s29 = scalar_lea.vmem [#allocation2], %s2807_s25 }
  0x16   : > { %s352_s14 = sshll.u32 %s345_s29, 4  ;;  %p3710_p12 = pnand %p3300_p9, %p3683_p5  ;;  %s3714_s14 = int_to_ptr.vmem [resolvable:$true] %s352_s14 }
  0x17   : > { %s3716_s17 = scalar_lea.sflag [#allocation3], %s341_s23 }
  0x18   : > { %p3488_p0 = pneg %p3710_p12 }
  0x1b   : > { %s3706_s28 = scalar_lea.hbm %s4436_s5, %s2860_s24  ;;  %s3491_s25 = scalar_lea.hbm %s4436_s5, 1536 }
  0x1c   : > { %s3486_s26 = scalar_lea.hbm %s3706_s28, 512  ;;  %p3492_p3 = scmp.lt.u32.totalorder %s3706_s28, %s4436_s5 }
  0x1d   : > { %p3487_p13 = scmp.ne.s32.totalorder %s3706_s28, %s3486_s26  ;;  %p3493_p4 = scmp.lt.u32.totalorder %s3491_s25, %s3486_s26 }
  0x1e   : > { %p3495_p7 = scmp.lt.u32.totalorder %s3486_s26, %s3706_s28 }
  0x1f   : > { %p3489_p1 = pnand %p3488_p0, %p3487_p13  ;;  %p3494_p5 = por %p3493_p4, %p3492_p3 }
  0x21   : > { %p3490_p2 = pneg %p3489_p1  ;;  %p3496_p8 = por %p3495_p7, %p3494_p5 }
  0x23   : > { %p3497_p9 = pnand %p3496_p8, %p3490_p2 }
  0x25   : > { %3500 = shalt.err (!%p3497_p9)
}
  0x26   : > { %s3501_s23 = scalar_lea.vmem %s3714_s14, 512  ;;  %s3584_s24 = smov [#allocation2]  }
  0x27   : > { %p3502_p13 = scmp.ne.s32.totalorder %s3714_s14, %s3501_s23  ;;  %s3506_s19 = sshll.u32 %s3584_s24, 4  ;;  %s3507_s19 = int_to_ptr.vmem [resolvable:$false] %s3506_s19 }
  0x28   : > { %s3508_s27 = scalar_lea.vmem %s3507_s19, 1024  ;;  %p3509_p10 = scmp.lt.s32.totalorder %s3714_s14, %s3507_s19 }
  0x29   : > { %p3504_p1 = pnand %p3502_p13, %p3488_p0  ;;  %p3510_p3 = scmp.lt.s32.totalorder %s3508_s27, %s3501_s23 }
  0x2b   : > { %p3505_p11 = pneg %p3504_p1  ;;  %p3511_p4 = por %p3510_p3, %p3509_p10 }
  0x2d   : > { %p3512_p5 = pnand %p3511_p4, %p3505_p11 }
  0x2f   : > { %3515 = shalt.err (!%p3512_p5)
}
  0x30   : > { %s3585_s26 = smov 128   ;;  %s3586_s25 = smov 8  }
  0x31   : > { %3295 = dma.hbm_to_vmem [thread:$0]  (!%p3710_p12), %s3706_s28, 512, %s3714_s14, %s3716_s17, %s3585_s26, %s3585_s26, %s3586_s25  }
  0x32   : > { %p2810_p0 = scmp.ge.s32.totalorder %s3582_s12, 1  ;;  %p378_p2 = scmp.lt.s32.totalorder %s3582_s12, 4 }
  0x34   : > { %p379_p7 = pnand %p2810_p0, %p378_p2 }
  0x35   : > { %s3747_s29 = sand.u32 (!%p379_p7), 1, %s3574_s10  }
  0x36   : > { %382 = sbr.rel (%p379_p7) target bundleno = 12084 (0x2f34), region = 56  ;;  %s2811_s23 = sshll.u32 (!%p379_p7), %s3747_s29, 5 }
  0x37   : > { %s385_s24 = scalar_lea.sflag (!%p379_p7), [#allocation3], %s3747_s29  ;;  %s3751_s19 = scalar_lea.vmem (!%p379_p7), [#allocation2], %s2811_s23 }
  0x3d   : > { %3561 = dma.done.wait (%p3687_p6), %s385_s24, 512  }
  0x3e   : > { %3563 = vsyncadd (%p3687_p6), %s385_s24, 4294966784  ;;  %p455_p10 = scmp.lt.s32.totalorder %s3665_s13, 2  ;;  %v3587_v0 = vmov 0.0|0.0   ;;  %vm3588_vm0 = vmmov 0   ;;  %v3589_v1 = vmov 0.0   ;;  %vm523_vm1 = vcmask 130048  }
  0x3f   : > { %3184 = vmatprep.subr.bf16.mxu1 %v3587_v0  ;;  %2992 = vmatprep.mubr.msk.f32.mxu1 %vm3588_vm0, %v3589_v1  ;;  %v487_v19 = vlaneseq  ;;  %vm658_vm6 = vcmask 261120   ;;  %vm2515_vm8 = vcmask 523520   ;;  %vm2536_vm9 = vcmask 785920   ;;  %s2865_s17 = sshll.u32 %s3665_s13, 8  ;;  %p4442_p11 = scmp.ne.s32.totalorder %s4434_s21, 0 }
  0x40   : > { %s3762_s28 = scalar_select %p455_p10, %s3665_s13, 2  ;;  %vm2557_vm10 = vcmask 1048320  }
  0x41   : > { %v3822_v22 = vand.u32 127, %v487_v19 }
  0x42   : > { %s2862_s14 = sshll.u32 %s3762_s28, 4  ;;  %s2861_s20 = sshll.u32 %s3762_s28, 6 }
  0x43   : > { %s464_s27 = scalar_lea.vmem %s4418_s1, %s2862_s14  ;;  %s3772_s23 = scalar_lea.vmem %s4417_s0, %s2861_s20  ;;  %v493_v26 = vand.u32 31, %v3822_v22  ;;  %vm502_vm3 = vcmp.ge.s32.totalorder %v3822_v22, 64  ;;  %vm503_vm4 = vcmp.lt.s32.totalorder %v3822_v22, 96  ;;  %vm505_vm7 = vcmp.lt.s32.totalorder %v3822_v22, 16 }
  0x44   : > { %s2863_s24 = sshll.u32 %s3762_s28, 5  ;;  %v514_v2 = vld [vmem:[%s464_s27] sm:$0xff]  ;;  %v515_v3 = vld [vmem:[%s464_s27 + $0x8] sm:$0xff]  ;;  %v508_v12 = vld [vmem:[%s3772_s23 + $0x10] sm:$0xff]  ;;  %s472_s18 = scalar_lea.vmem %s4420_s3, %s3762_s28 }
  0x45   : > { %v506_v4 = vld [vmem:[%s3772_s23] sm:$0xff]  ;;  %s469_s11 = scalar_lea.vmem %s4419_s2, %s2863_s24  ;;  %v3180_v5 = vpack.c.bf16 %v515_v3, %v514_v2  ;;  %v507_v10 = vld [vmem:[%s3772_s23 + $0x8] sm:$0xff]  ;;  %v509_v14 = vld [vmem:[%s3772_s23 + $0x18] sm:$0xff]  ;;  %vm3831_vm2 = vcmp.lt.s32.totalorder %v493_v26, 16  ;;  %s3590_s14 = smov 64  }
  0x46   : > { %2972 = vmatprep.mubr.msk.f32.mxu0 %vm523_vm1, %v506_v4  ;;  %v653_v6 = vld [vmem:[%s469_s11] sm:$0xff]  ;;  %v654_v7 = vld [vmem:[%s469_s11 + $0x8] sm:$0xff]  ;;  %v655_v9 = vld [vmem:[%s469_s11 + $0x10] sm:$0xff]  ;;  %s3591_s20 = smov 32   ;;  %s477_s27 = scalar_lea.vmem %s4421_s4, %s2863_s24 }
  0x47   : > { %3181 = vmatprep.subr.bf16.mxu0 %v3180_v5  ;;  %v3782_v8 = vpack.c.bf16 %v654_v7, %v653_v6  ;;  %v656_v11 = vld [vmem:[%s469_s11 + $0x18] sm:$0xff]  ;;  %v510_v15 = vld [vmem:[%s3772_s23 + $0x20] sm:$0xff]  ;;  %v511_v16 = vld [vmem:[%s3772_s23 + $0x28] sm:$0xff]  ;;  %s480_s25 = scalar_lea.vmem %s4423_s6, %s3762_s28  ;;  %s483_s5 = scalar_lea.vmem %s4424_s7, %s3762_s28 }
  0x48   : > { %3183 = vmatpush3.bf16.msra.mxu0 %v3180_v5  ;;  %v3787_v13 = vpack.c.bf16 %v656_v11, %v655_v9  ;;  %v512_v17 = vld [vmem:[%s3772_s23 + $0x30] sm:$0xff]  ;;  %v513_v18 = vld [vmem:[%s3772_s23 + $0x38] sm:$0xff]  ;;  %v2821_v20 = vld [vmem:[%s472_s18] ss:$0 sm:$0xff]  ;;  %s486_s16 = scalar_lea.vmem %s4425_s8, %s3762_s28  ;;  %s3592_s28 = smov 96  }
  0x49   : > { %3186 = vmatpush3.bf16.msra.mxu1 %v3782_v8  ;;  %3196 = vmatprep.subr.bf16.mxu0 %v3587_v0  ;;  %vm3879_vm5 = vmand %vm502_vm3, %vm503_vm4  ;;  %s2636_s23 = scalar_lea.sflag [#allocation4], %s3747_s29  ;;  %s3593_s24 = smov [#allocation5]  }
  0x4a   : > { %3187 = vmatprep.subr.bf16.mxu1 %v3587_v0 }
  0x4b   : > { %2973 = vmatmul.mubr.msk.f32.vlgmr.msra.gmra.mrb[0].mxu0 %vm523_vm1, %v507_v10 }
  0x4c   : > { %2975 = vmatprep.mubr.msk.f32.mxu0 %vm523_vm1, %v508_v12  ;;  %3198 = vmatpush3.bf16.msra.mxu0 %v3782_v8 }
  0x4d   : > { %3189 = vmatpush3.bf16.msra.mxu1 %v3787_v13  ;;  %3199 = vmatprep.subr.bf16.mxu0 %v3587_v0 }
  0x4e   : > { %3190 = vmatprep.subr.bf16.mxu1 %v3587_v0 }
  0x4f   : > { %2976 = vmatmul.mubr.msk.f32.gmra.mrb[2].mxu0 %vm523_vm1, %v509_v14 }
  0x50   : > { %2978 = vmatprep.mubr.msk.f32.mxu0 %vm523_vm1, %v510_v15  ;;  %2993 = vmatmul.mubr.f32.vlgmr.msra.gmra.mrb[0].mxu1 %v3589_v1 }
  0x51   : > { %3192 = vmatpush3.bf16.msra.mxu1 %v3782_v8  ;;  %3003 = vmatprep.mubr.msk.f32.mxu1 %vm3588_vm0, %v3589_v1 }
  0x52   : > { %3193 = vmatprep.subr.bf16.mxu1 %v3587_v0  ;;  %3201 = vmatpush3.bf16.msra.mxu0 %v3787_v13 }
  0x53   : > { %2979 = vmatmul.mubr.msk.f32.gmra.mrb[4].mxu0 %vm523_vm1, %v511_v16  ;;  %3208 = vmatprep.subr.bf16.mxu0 %v3587_v0 }
  0x54   : > { %2981 = vmatprep.mubr.msk.f32.mxu0 %vm523_vm1, %v512_v17 }
  0x55   : > { %3195 = vmatpush3.bf16.msra.mxu1 %v3787_v13 }
  0x56   : > { %3202 = vmatprep.subr.bf16.mxu1 %v3587_v0 }
  0x57   : > { %2982 = vmatmul.mubr.msk.f32.gmra.mrb[6].mxu0 %vm523_vm1, %v513_v18 }
  0x58   : > { %3014 = vmatprep.mubr.msk.f32.mxu0 %vm3588_vm0, %v3589_v1 }
 0x11e   : > { %v2974_v21 = vpop.f32.mrb[0].mxu0 }
 0x11f   : > { %v3824_v23 = vadd.f32 %v2974_v21, %v2821_v20  ;;  %v614_v24 = vpop.f32.mrb[1].mxu0 }
 0x120   : > { %v3855_v42 = vadd.f32 %v2821_v20, %v614_v24 }
 0x122   : > { %v2977_v25 = vpop.f32.mrb[2].mxu0 }
 0x123   : > { %v3827_v27 = vadd.f32 %v2977_v25, %v2821_v20  ;;  %v624_v28 = vpop.f32.mrb[3].mxu0  ;;  %v728_v29 = vpop.f32.mrb[0].mxu1 }
 0x124   : > { %v3829_v30 = vadd.f32 %v2821_v20, %v624_v28  ;;  %v2994_v31 = vpop.f32.mrb[1].mxu1 }
 0x126   : > { %v2980_v32 = vpop.f32.mrb[4].mxu0 }
 0x127   : > { %v3835_v34 = vadd.f32 %v2980_v32, %v2821_v20  ;;  %v634_v35 = vpop.f32.mrb[5].mxu0 }
 0x128   : > { %v3837_v36 = vadd.f32 %v2821_v20, %v634_v35 }
 0x129   : > { %v860_v37 = vsel %vm3831_vm2, %v3829_v30, %v3835_v34  ;;  %v1166_v38 = vsel %vm3831_vm2, %v3835_v34, %v3829_v30 }
 0x12a   : > { %v2983_v39 = vpop.f32.mrb[6].mxu0  ;;  %v962_v40 = vsel %vm3831_vm2, %v3827_v27, %v3837_v36  ;;  %v1064_v41 = vsel %vm3831_vm2, %v3837_v36, %v3827_v27 }
 0x12b   : > { %v3857_v43 = vadd.f32 %v2983_v39, %v2821_v20  ;;  %v644_v44 = vpop.f32.mrb[7].mxu0 }
 0x12c   : > { %v3859_v45 = vadd.f32 %v2821_v20, %v644_v44 }
 0x12d   : > { %v657_v46 = vsel %vm3831_vm2, %v3855_v42, %v3857_v43  ;;  %v1370_v47 = vsel %vm3831_vm2, %v3857_v43, %v3855_v42 }
 0x12e   : > { %v732_v48 = vadd.f32 %v728_v29, %v657_v46  ;;  %v758_v49 = vsel %vm3831_vm2, %v3824_v23, %v3859_v45  ;;  %v1268_v50 = vsel %vm3831_vm2, %v3859_v45, %v3824_v23 }
 0x130   : > { %v734_v51 = vsub.f32 0.0, %v732_v48 }
 0x132   : > { %v735_v52 = vmul.f32 1.442695, %v734_v51 }
 0x134   : > { %3342 = vpow2.f32 %v735_v52 }
 0x135   : > { %3344 = vtanh.f32 %v732_v48 }
 0x13e   : > { %v3343_v53 = vpop.eup %3342 }
 0x13f   : > { %v737_v54 = vadd.f32 1.0, %v3343_v53  ;;  %v3345_v56 = vpop.eup %3344 }
 0x141   : > { %3346 = vrcp.f32 %v737_v54 }
 0x14b   : > { %v3347_v57 = vpop.eup %3346 }
 0x14c   : > { %v740_v58 = vsel %vm3879_vm5, %v3345_v56, %v3347_v57 }
 0x14d   : > { %743 = vrot.lane.b32.xlu0 %v740_v58, %s3590_s14  ;;  %v741_v61 = vmul.f32 0.0, %v740_v58 }
 0x1bf   : > { %v744_v59 = vpop.permute.xlu0 %743 }
 0x1c0   : > { %v746_v60 = vmul.f32 %v744_v59, %v740_v58 }
 0x1c2   : > { %748 = vrot.lane.b32.xlu0 %v746_v60, %s3591_s20 }
 0x234   : > { %v749_v62 = vpop.permute.xlu0 %748 }
 0x235   : > { %v751_v63 = vadd.f32 %v749_v62, %v741_v61 }
 0x237   : > { %3348 = vtanh.f32 %v751_v63 }
 0x241   : > { %v3349_v2 = vpop.eup %3348 }
 0x242   : > { %754 = vrot.lane.b32.xlu1 %v3349_v2, %s3590_s14 }
 0x2b4   : > { %v755_v3 = vpop.permute.xlu1 %754 }
 0x2b5   : > { %v757_v4 = vmul.f32 %v755_v3, %v740_v58 }
 0x2b7   : > { %760 = vrot.lane.b32.xlu1 %v757_v4, %s3591_s20 }
 0x329   : > { %v3889_v5 = vpop.permute.xlu1 %760 }
 0x32a   : > { %3004 = vmatmul.mubr.msk.f32.vlgmr.msra.gmra.mrb[2].mxu1 %vm658_vm6, %v3889_v5 }
 0x32b   : > { %3204 = vmatpush3.bf16.msra.mxu1 %v3782_v8  ;;  %3025 = vmatprep.mubr.msk.f32.mxu1 %vm3588_vm0, %v3589_v1 }
 0x32c   : > { %3205 = vmatprep.subr.bf16.mxu1 %v3587_v0 }
 0x32f   : > { %3207 = vmatpush3.bf16.msra.mxu1 %v3787_v13 }
 0x330   : > { %3214 = vmatprep.subr.bf16.mxu1 %v3587_v0 }
 0x3fd   : > { %v830_v6 = vpop.f32.mrb[2].mxu1 }
 0x3fe   : > { %v834_v7 = vadd.f32 %v830_v6, %v758_v49  ;;  %v3005_v9 = vpop.f32.mrb[3].mxu1 }
 0x400   : > { %v836_v10 = vsub.f32 0.0, %v834_v7 }
 0x402   : > { %v837_v11 = vmul.f32 1.442695, %v836_v10 }
 0x404   : > { %3350 = vpow2.f32 %v837_v11 }
 0x405   : > { %3352 = vtanh.f32 %v834_v7 }
 0x40e   : > { %v3351_v12 = vpop.eup %3350 }
 0x40f   : > { %v839_v14 = vadd.f32 1.0, %v3351_v12  ;;  %v3353_v15 = vpop.eup %3352 }
 0x411   : > { %3354 = vrcp.f32 %v839_v14 }
 0x41b   : > { %v3355_v16 = vpop.eup %3354 }
 0x41c   : > { %v842_v17 = vsel %vm3879_vm5, %v3353_v15, %v3355_v16 }
 0x41d   : > { %845 = vrot.lane.b32.xlu0 %v842_v17, %s3590_s14  ;;  %v843_v20 = vmul.f32 %v842_v17, %v751_v63 }
 0x48f   : > { %v846_v18 = vpop.permute.xlu0 %845 }
 0x490   : > { %v848_v19 = vmul.f32 %v846_v18, %v842_v17 }
 0x492   : > { %850 = vrot.lane.b32.xlu1 %v848_v19, %s3591_s20 }
 0x504   : > { %v851_v21 = vpop.permute.xlu1 %850 }
 0x505   : > { %v853_v24 = vadd.f32 %v851_v21, %v843_v20 }
 0x507   : > { %3356 = vtanh.f32 %v853_v24 }
 0x511   : > { %v3357_v25 = vpop.eup %3356 }
 0x512   : > { %856 = vrot.lane.b32.xlu0 %v3357_v25, %s3590_s14 }
 0x584   : > { %v857_v26 = vpop.permute.xlu0 %856 }
 0x585   : > { %v859_v28 = vmul.f32 %v857_v26, %v842_v17 }
 0x587   : > { %862 = vrot.lane.b32.xlu1 %v859_v28, %s3591_s20 }
 0x5f9   : > { %v3905_v29 = vpop.permute.xlu1 %862 }
 0x5fa   : > { %3015 = vmatmul.mubr.msk.f32.vlgmr.msra.gmra.mrb[8].mxu0 %vm658_vm6, %v3905_v29 }
 0x5fb   : > { %3210 = vmatpush3.bf16.msra.mxu0 %v3782_v8  ;;  %3036 = vmatprep.mubr.msk.f32.mxu0 %vm3588_vm0, %v3589_v1 }
 0x5fc   : > { %3211 = vmatprep.subr.bf16.mxu0 %v3587_v0 }
 0x5ff   : > { %3213 = vmatpush3.bf16.msra.mxu0 %v3787_v13 }
 0x600   : > { %3220 = vmatprep.subr.bf16.mxu0 %v3587_v0 }
 0x6cd   : > { %v932_v31 = vpop.f32.mrb[8].mxu0 }
 0x6ce   : > { %v936_v32 = vadd.f32 %v932_v31, %v860_v37  ;;  %v3016_v35 = vpop.f32.mrb[9].mxu0 }
 0x6d0   : > { %v938_v39 = vsub.f32 0.0, %v936_v32 }
 0x6d2   : > { %v939_v44 = vmul.f32 1.442695, %v938_v39 }
 0x6d4   : > { %3358 = vpow2.f32 %v939_v44 }
 0x6d5   : > { %3360 = vtanh.f32 %v936_v32 }
 0x6de   : > { %v3359_v46 = vpop.eup %3358 }
 0x6df   : > { %v941_v48 = vadd.f32 1.0, %v3359_v46  ;;  %v3361_v49 = vpop.eup %3360 }
 0x6e1   : > { %3362 = vrcp.f32 %v941_v48 }
 0x6eb   : > { %v3363_v51 = vpop.eup %3362 }
 0x6ec   : > { %v944_v52 = vsel %vm3879_vm5, %v3361_v49, %v3363_v51 }
 0x6ed   : > { %947 = vrot.lane.b32.xlu0 %v944_v52, %s3590_s14  ;;  %v945_v37 = vmul.f32 %v944_v52, %v853_v24 }
 0x75f   : > { %v948_v53 = vpop.permute.xlu0 %947 }
 0x760   : > { %v950_v54 = vmul.f32 %v948_v53, %v944_v52 }
 0x762   : > { %952 = vrot.lane.b32.xlu1 %v950_v54, %s3591_s20 }
 0x7d4   : > { %v953_v56 = vpop.permute.xlu1 %952 }
 0x7d5   : > { %v955_v57 = vadd.f32 %v953_v56, %v945_v37 }
 0x7d7   : > { %3364 = vtanh.f32 %v955_v57 }
 0x7e1   : > { %v3365_v58 = vpop.eup %3364 }
 0x7e2   : > { %958 = vrot.lane.b32.xlu0 %v3365_v58, %s3590_s14 }
 0x854   : > { %v959_v59 = vpop.permute.xlu0 %958 }
 0x855   : > { %v961_v60 = vmul.f32 %v959_v59, %v944_v52 }
 0x857   : > { %964 = vrot.lane.b32.xlu1 %v961_v60, %s3591_s20 }
 0x8c9   : > { %v3926_v61 = vpop.permute.xlu1 %964 }
 0x8ca   : > { %3026 = vmatmul.mubr.msk.f32.vlgmr.msra.gmra.mrb[4].mxu1 %vm658_vm6, %v3926_v61 }
 0x8cb   : > { %3216 = vmatpush3.bf16.msra.mxu1 %v3782_v8  ;;  %3047 = vmatprep.mubr.msk.f32.mxu1 %vm3588_vm0, %v3589_v1 }
 0x8cc   : > { %3217 = vmatprep.subr.bf16.mxu1 %v3587_v0 }
 0x8cf   : > { %3219 = vmatpush3.bf16.msra.mxu1 %v3787_v13 }
 0x8d0   : > { %3226 = vmatprep.subr.bf16.mxu1 %v3587_v0 }
 0x99d   : > { %v1034_v62 = vpop.f32.mrb[4].mxu1 }
 0x99e   : > { %v1038_v63 = vadd.f32 %v1034_v62, %v962_v40  ;;  %v3027_v2 = vpop.f32.mrb[5].mxu1 }
 0x9a0   : > { %v1040_v3 = vsub.f32 0.0, %v1038_v63 }
 0x9a2   : > { %v1041_v4 = vmul.f32 1.442695, %v1040_v3 }
 0x9a4   : > { %3366 = vpow2.f32 %v1041_v4 }
 0x9a5   : > { %3368 = vtanh.f32 %v1038_v63 }
 0x9ae   : > { %v3367_v6 = vpop.eup %3366 }
 0x9af   : > { %v1043_v7 = vadd.f32 1.0, %v3367_v6  ;;  %v3369_v9 = vpop.eup %3368 }
 0x9b1   : > { %3370 = vrcp.f32 %v1043_v7 }
 0x9bb   : > { %v3371_v10 = vpop.eup %3370 }
 0x9bc   : > { %v1046_v11 = vsel %vm3879_vm5, %v3369_v9, %v3371_v10 }
 0x9bd   : > { %1049 = vrot.lane.b32.xlu0 %v1046_v11, %s3590_s14  ;;  %v1047_v40 = vmul.f32 %v1046_v11, %v955_v57 }
 0xa2f   : > { %v1050_v12 = vpop.permute.xlu0 %1049 }
 0xa30   : > { %v1052_v14 = vmul.f32 %v1050_v12, %v1046_v11 }
 0xa32   : > { %1054 = vrot.lane.b32.xlu1 %v1052_v14, %s3591_s20 }
 0xaa4   : > { %v1055_v15 = vpop.permute.xlu1 %1054 }
 0xaa5   : > { %v1057_v16 = vadd.f32 %v1055_v15, %v1047_v40 }
 0xaa7   : > { %3372 = vtanh.f32 %v1057_v16 }
 0xab1   : > { %v3373_v17 = vpop.eup %3372 }
 0xab2   : > { %1060 = vrot.lane.b32.xlu0 %v3373_v17, %s3590_s14 }
 0xb24   : > { %v1061_v18 = vpop.permute.xlu0 %1060 }
 0xb25   : > { %v1063_v19 = vmul.f32 %v1061_v18, %v1046_v11 }
 0xb27   : > { %1066 = vrot.lane.b32.xlu1 %v1063_v19, %s3591_s20 }
 0xb99   : > { %v3947_v20 = vpop.permute.xlu1 %1066 }
 0xb9a   : > { %3037 = vmatmul.mubr.msk.f32.vlgmr.msra.gmra.mrb[10].mxu0 %vm658_vm6, %v3947_v20 }
 0xb9b   : > { %3222 = vmatpush3.bf16.msra.mxu0 %v3782_v8  ;;  %3058 = vmatprep.mubr.msk.f32.mxu0 %vm3588_vm0, %v3589_v1 }
 0xb9c   : > { %3223 = vmatprep.subr.bf16.mxu0 %v3587_v0 }
 0xb9f   : > { %3225 = vmatpush3.bf16.msra.mxu0 %v3787_v13 }
 0xc6d   : > { %v1136_v21 = vpop.f32.mrb[10].mxu0 }
 0xc6e   : > { %v1140_v24 = vadd.f32 %v1136_v21, %v1064_v41  ;;  %v3038_v25 = vpop.f32.mrb[11].mxu0 }
 0xc70   : > { %v1142_v26 = vsub.f32 0.0, %v1140_v24 }
 0xc72   : > { %v1143_v28 = vmul.f32 1.442695, %v1142_v26 }
 0xc74   : > { %3374 = vpow2.f32 %v1143_v28 }
 0xc75   : > { %3376 = vtanh.f32 %v1140_v24 }
 0xc7e   : > { %v3375_v31 = vpop.eup %3374 }
 0xc7f   : > { %v1145_v32 = vadd.f32 1.0, %v3375_v31  ;;  %v3377_v35 = vpop.eup %3376 }
 0xc81   : > { %3378 = vrcp.f32 %v1145_v32 }
 0xc8b   : > { %v3379_v39 = vpop.eup %3378 }
 0xc8c   : > { %v1148_v44 = vsel %vm3879_vm5, %v3377_v35, %v3379_v39 }
 0xc8d   : > { %1151 = vrot.lane.b32.xlu0 %v1148_v44, %s3590_s14  ;;  %v1149_v27 = vmul.f32 %v1148_v44, %v1057_v16 }
 0xcff   : > { %v1152_v46 = vpop.permute.xlu0 %1151 }
 0xd00   : > { %v1154_v48 = vmul.f32 %v1152_v46, %v1148_v44 }
 0xd02   : > { %1156 = vrot.lane.b32.xlu1 %v1154_v48, %s3591_s20 }
 0xd74   : > { %v1157_v36 = vpop.permute.xlu1 %1156 }
 0xd75   : > { %v1159_v41 = vadd.f32 %v1157_v36, %v1149_v27 }
 0xd77   : > { %3380 = vtanh.f32 %v1159_v41 }
 0xd81   : > { %v3381_v49 = vpop.eup %3380 }
 0xd82   : > { %1162 = vrot.lane.b32.xlu0 %v3381_v49, %s3590_s14 }
 0xdf4   : > { %v1163_v51 = vpop.permute.xlu0 %1162 }
 0xdf5   : > { %v1165_v52 = vmul.f32 %v1163_v51, %v1148_v44 }
 0xdf7   : > { %1168 = vrot.lane.b32.xlu1 %v1165_v52, %s3591_s20  ;;  %v1491_v52 = vld [vmem:[%s477_s27] sm:$0xff] }
 0xe69   : > { %v3967_v53 = vpop.permute.xlu1 %1168 }
 0xe6a   : > { %3048 = vmatmul.mubr.msk.f32.vlgmr.msra.gmra.mrb[6].mxu1 %vm658_vm6, %v3967_v53 }
 0xe6b   : > { %3228 = vmatpush3.bf16.msra.mxu1 %v3782_v8  ;;  %3069 = vmatprep.mubr.msk.f32.mxu1 %vm3588_vm0, %v3589_v1 }
 0xe6c   : > { %3229 = vmatprep.subr.bf16.mxu1 %v3587_v0 }
 0xe6f   : > { %3231 = vmatpush3.bf16.msra.mxu1 %v3787_v13 }
 0xe70   : > { %3240 = vmatprep.subr.bf16.mxu1 %v3587_v0 }
 0xf3d   : > { %v1238_v54 = vpop.f32.mrb[6].mxu1 }
 0xf3e   : > { %v1242_v37 = vadd.f32 %v1238_v54, %v1166_v38  ;;  %v3049_v56 = vpop.f32.mrb[7].mxu1  ;;  %v1492_v54 = vld [vmem:[%s477_s27 + $0x8] sm:$0xff] }
 0xf3f   : > { %v3232_v56 = vpack.c.bf16 %v1492_v54, %v1491_v52 }
 0xf40   : > { %v1244_v57 = vsub.f32 0.0, %v1242_v37 }
 0xf41   : > { %3233 = vmatprep.subr.bf16.mxu0 %v3232_v56 }
 0xf42   : > { %v1245_v58 = vmul.f32 1.442695, %v1244_v57  ;;  %v1494_v57 = vld [vmem:[%s477_s27 + $0x18] sm:$0xff] }
 0xf44   : > { %3382 = vpow2.f32 %v1245_v58 }
 0xf45   : > { %3384 = vtanh.f32 %v1242_v37  ;;  %v1493_v37 = vld [vmem:[%s477_s27 + $0x10] sm:$0xff] }
 0xf46   : > { %v3236_v58 = vpack.c.bf16 %v1494_v57, %v1493_v37 }
 0xf4e   : > { %v3383_v8 = vpop.eup %3382 }
 0xf4f   : > { %v1247_v59 = vadd.f32 1.0, %v3383_v8  ;;  %v3385_v60 = vpop.eup %3384 }
 0xf51   : > { %3386 = vrcp.f32 %v1247_v59  ;;  %v1631_v59 = vld [vmem:[%s3751_s19] sm:$0xff] }
 0xf5b   : > { %v3387_v62 = vpop.eup %3386 }
 0xf5c   : > { %v1250_v13 = vsel %vm3879_vm5, %v3385_v60, %v3387_v62  ;;  %v1632_v60 = vld [vmem:[%s3751_s19 + $0x8] sm:$0xff] }
 0xf5d   : > { %1253 = vrot.lane.b32.xlu0 %v1250_v13, %s3590_s14  ;;  %v1251_v30 = vmul.f32 %v1250_v13, %v1159_v41  ;;  %v4027_v62 = vpack.c.bf16 %v1632_v60, %v1631_v59 }
 0xfcf   : > { %v1254_v63 = vpop.permute.xlu0 %1253 }
 0xfd0   : > { %v1256_v2 = vmul.f32 %v1254_v63, %v1250_v13  ;;  %v1633_v63 = vld [vmem:[%s3751_s19 + $0x10] sm:$0xff] }
 0xfd2   : > { %1258 = vrot.lane.b32.xlu1 %v1256_v2, %s3591_s20  ;;  %v1634_v2 = vld [vmem:[%s3751_s19 + $0x18] sm:$0xff] }
0x1044   : > { %v1259_v34 = vpop.permute.xlu1 %1258 }
0x1045   : > { %v1261_v38 = vadd.f32 %v1259_v34, %v1251_v30  ;;  %v4033_v34 = vpack.c.bf16 %v1634_v2, %v1633_v63 }
0x1047   : > { %3388 = vtanh.f32 %v1261_v38 }
0x1051   : > { %v3389_v3 = vpop.eup %3388 }
0x1052   : > { %1264 = vrot.lane.b32.xlu0 %v3389_v3, %s3590_s14 }
0x10c4   : > { %v1265_v4 = vpop.permute.xlu0 %1264 }
0x10c5   : > { %v1267_v6 = vmul.f32 %v1265_v4, %v1250_v13 }
0x10c7   : > { %1270 = vrot.lane.b32.xlu1 %v1267_v6, %s3591_s20 }
0x1139   : > { %v3988_v7 = vpop.permute.xlu1 %1270 }
0x113a   : > { %3059 = vmatmul.mubr.msk.f32.vlgmr.msra.gmra.mrb[12].mxu0 %vm658_vm6, %v3988_v7  ;;  %v1483_v6 = vsel %vm505_vm7, %v3926_v61, %v3988_v7 }
0x113b   : > { %3235 = vmatpush3.bf16.msra.mxu0 %v3232_v56 }
0x113c   : > { %3237 = vmatprep.subr.bf16.mxu0 %v3236_v58 }
0x113f   : > { %3239 = vmatpush3.bf16.msra.mxu0 %v3236_v58 }
0x1140   : > { %3252 = vmatprep.subr.bf16.mxu0 %v3587_v0 }
0x120d   : > { %v1340_v9 = vpop.f32.mrb[12].mxu0 }
0x120e   : > { %v1344_v10 = vadd.f32 %v1340_v9, %v1268_v50  ;;  %v3060_v11 = vpop.f32.mrb[13].mxu0  ;;  %v1486_v9 = vsel %vm505_vm7, %v3947_v20, %v3967_v53 }
0x120f   : > { %v1488_v11 = vsel %vm505_vm7, %v3988_v7, %v3926_v61  ;;  %v2837_v7 = vld [vmem:[%s480_s25] ss:$0 sm:$0xff]  ;;  %s4373_s25 = scalar_lea.hbm %s4426_s9, %s2865_s17 }
0x1210   : > { %v1346_v12 = vsub.f32 0.0, %v1344_v10 }
0x1212   : > { %v1347_v14 = vmul.f32 1.442695, %v1346_v12 }
0x1214   : > { %3390 = vpow2.f32 %v1347_v14 }
0x1215   : > { %3392 = vtanh.f32 %v1344_v10  ;;  %v1487_v10 = vsel %vm505_vm7, %v3967_v53, %v3947_v20 }
0x121e   : > { %v3391_v40 = vpop.eup %3390 }
0x121f   : > { %v1349_v15 = vadd.f32 1.0, %v3391_v40  ;;  %v3393_v16 = vpop.eup %3392 }
0x1221   : > { %3394 = vrcp.f32 %v1349_v15 }
0x122b   : > { %v3395_v17 = vpop.eup %3394 }
0x122c   : > { %v1352_v18 = vsel %vm3879_vm5, %v3393_v16, %v3395_v17 }
0x122d   : > { %1355 = vrot.lane.b32.xlu0 %v1352_v18, %s3590_s14  ;;  %v1353_v23 = vmul.f32 %v1352_v18, %v1261_v38 }
0x129f   : > { %v1356_v19 = vpop.permute.xlu0 %1355 }
0x12a0   : > { %v1358_v21 = vmul.f32 %v1356_v19, %v1352_v18 }
0x12a2   : > { %1360 = vrot.lane.b32.xlu1 %v1358_v21, %s3591_s20 }
0x1314   : > { %v1361_v45 = vpop.permute.xlu1 %1360 }
0x1315   : > { %v1363_v50 = vadd.f32 %v1361_v45, %v1353_v23 }
0x1317   : > { %3396 = vtanh.f32 %v1363_v50 }
0x1321   : > { %v3397_v24 = vpop.eup %3396 }
0x1322   : > { %1366 = vrot.lane.b32.xlu0 %v3397_v24, %s3590_s14 }
0x1394   : > { %v1367_v25 = vpop.permute.xlu0 %1366 }
0x1395   : > { %v1369_v26 = vmul.f32 %v1367_v25, %v1352_v18 }
0x1397   : > { %1372 = vrot.lane.b32.xlu1 %v1369_v26, %s3591_s20 }
0x1409   : > { %v4003_v28 = vpop.permute.xlu1 %1372 }
0x140a   : > { %3070 = vmatmul.mubr.msk.f32.vlgmr.msra.gmra.mrb[8].mxu1 %vm658_vm6, %v4003_v28  ;;  %v1480_v4 = vsel %vm505_vm7, %v3905_v29, %v4003_v28  ;;  %v1489_v12 = vsel %vm505_vm7, %v4003_v28, %v3905_v29 }
0x140b   : > { %3100 = vmatprep.mubr.msk.f32.mxu1 %vm3588_vm0, %v3589_v1  ;;  %3242 = vmatpush3.bf16.msra.mxu1 %v4027_v62 }
0x140c   : > { %3243 = vmatprep.subr.bf16.mxu1 %v3587_v0 }
0x140f   : > { %3245 = vmatpush3.bf16.msra.mxu1 %v4033_v34 }
0x1410   : > { %3246 = vmatprep.subr.bf16.mxu1 %v3587_v0 }
0x1412   : > { %3101 = vmatmul.mubr.f32.vlgmr.msra.gmra.mrb[10].mxu1 %v3589_v1 }
0x1413   : > { %3248 = vmatpush3.bf16.msra.mxu1 %v4027_v62  ;;  %3111 = vmatprep.mubr.msk.f32.mxu1 %vm3588_vm0, %v3589_v1 }
0x1414   : > { %3249 = vmatprep.subr.bf16.mxu1 %v3587_v0 }
0x1417   : > { %3251 = vmatpush3.bf16.msra.mxu1 %v4033_v34 }
0x1418   : > { %3258 = vmatprep.subr.bf16.mxu1 %v3587_v0 }
0x14dd   : > { %v1442_v31 = vpop.f32.mrb[8].mxu1 }
0x14de   : > { %v1446_v32 = vadd.f32 %v1442_v31, %v1370_v47  ;;  %v3071_v35 = vpop.f32.mrb[9].mxu1 }
0x14e0   : > { %v1448_v39 = vsub.f32 0.0, %v1446_v32 }
0x14e2   : > { %v1449_v44 = vmul.f32 1.442695, %v1448_v39 }
0x14e4   : > { %3398 = vpow2.f32 %v1449_v44 }
0x14e5   : > { %3400 = vtanh.f32 %v1446_v32  ;;  %v1702_v53 = vpop.f32.mrb[10].mxu1 }
0x14e6   : > { %v3102_v61 = vpop.f32.mrb[11].mxu1 }
0x14ee   : > { %v3399_v46 = vpop.eup %3398 }
0x14ef   : > { %v1451_v48 = vadd.f32 1.0, %v3399_v46  ;;  %v3401_v27 = vpop.eup %3400 }
0x14f1   : > { %3402 = vrcp.f32 %v1451_v48 }
0x14fb   : > { %v3403_v36 = vpop.eup %3402 }
0x14fc   : > { %v1454_v41 = vsel %vm3879_vm5, %v3401_v27, %v3403_v36 }
0x14fd   : > { %1457 = vrot.lane.b32.xlu0 %v1454_v41, %s3590_s14  ;;  %v1455_v42 = vmul.f32 %v1454_v41, %v1363_v50 }
0x156f   : > { %v1458_v49 = vpop.permute.xlu0 %1457 }
0x1570   : > { %v1460_v51 = vmul.f32 %v1458_v49, %v1454_v41 }
0x1572   : > { %1462 = vrot.lane.b32.xlu1 %v1460_v51, %s3591_s20 }
0x15e4   : > { %v1463_v43 = vpop.permute.xlu1 %1462 }
0x15e5   : > { %v1465_v47 = vadd.f32 %v1463_v43, %v1455_v42 }
0x15e7   : > { %3404 = vtanh.f32 %v1465_v47 }
0x15f1   : > { %v3405_v8 = vpop.eup %3404 }
0x15f2   : > { %1468 = vrot.lane.b32.xlu0 %v3405_v8, %s3590_s14 }
0x1664   : > { %v1469_v13 = vpop.permute.xlu0 %1468 }
0x1665   : > { %v1471_v30 = vmul.f32 %v1469_v13, %v1454_v41 }
0x1667   : > { %1474 = vrot.lane.b32.xlu1 %v1471_v30, %s3591_s20 }
0x16d9   : > { %v1475_v38 = vpop.permute.xlu1 %1474 }
0x16da   : > { %v1477_v3 = vsel %vm505_vm7, %v3889_v5, %v1475_v38  ;;  %v1490_v20 = vsel %vm505_vm7, %v1475_v38, %v3889_v5 }
0x16db   : > { %3080 = vmatprep.mubr.msk.f32.mxu0 %vm658_vm6, %v1477_v3 }
0x16dc   : > { %3081 = vmatmul.mubr.msk.f32.vlgmr.msra.gmra.mrb[14].mxu0 %vm658_vm6, %v1480_v4 }
0x16dd   : > { %3083 = vmatprep.mubr.msk.f32.mxu0 %vm658_vm6, %v1483_v6  ;;  %3254 = vmatpush3.bf16.msra.mxu0 %v4027_v62 }
0x16de   : > { %3255 = vmatprep.subr.bf16.mxu0 %v3587_v0 }
0x16e0   : > { %3084 = vmatmul.mubr.msk.f32.gmra.mrb[16].mxu0 %vm658_vm6, %v1486_v9 }
0x16e1   : > { %3086 = vmatprep.mubr.msk.f32.mxu0 %vm658_vm6, %v1487_v10  ;;  %3257 = vmatpush3.bf16.msra.mxu0 %v4033_v34 }
0x16e2   : > { %3264 = vmatprep.subr.bf16.mxu0 %v3587_v0 }
0x16e4   : > { %3087 = vmatmul.mubr.msk.f32.gmra.mrb[18].mxu0 %vm658_vm6, %v1488_v11 }
0x16e5   : > { %3089 = vmatprep.mubr.msk.f32.mxu0 %vm658_vm6, %v1489_v12 }
0x16e8   : > { %3090 = vmatmul.mubr.msk.f32.gmra.mrb[20].mxu0 %vm658_vm6, %v1490_v20 }
0x16e9   : > { %3122 = vmatprep.mubr.msk.f32.mxu0 %vm3588_vm0, %v3589_v1 }
0x17af   : > { %v3082_v14 = vpop.f32.mrb[14].mxu0 }
0x17b0   : > { %v4094_v29 = vadd.f32 %v3082_v14, %v2837_v7  ;;  %v1592_v40 = vpop.f32.mrb[15].mxu0 }
0x17b1   : > { %v4120_v28 = vadd.f32 %v2837_v7, %v1592_v40 }
0x17b3   : > { %v3085_v15 = vpop.f32.mrb[16].mxu0 }
0x17b4   : > { %v4096_v16 = vadd.f32 %v3085_v15, %v2837_v7  ;;  %v1602_v5 = vpop.f32.mrb[17].mxu0 }
0x17b5   : > { %v4098_v17 = vadd.f32 %v2837_v7, %v1602_v5 }
0x17b7   : > { %v3088_v18 = vpop.f32.mrb[18].mxu0 }
0x17b8   : > { %v4100_v19 = vadd.f32 %v3088_v18, %v2837_v7  ;;  %v1612_v21 = vpop.f32.mrb[19].mxu0 }
0x17b9   : > { %v4102_v23 = vadd.f32 %v2837_v7, %v1612_v21 }
0x17ba   : > { %v1834_v45 = vsel %vm3831_vm2, %v4098_v17, %v4100_v19  ;;  %v2140_v50 = vsel %vm3831_vm2, %v4100_v19, %v4098_v17 }
0x17bb   : > { %v3091_v24 = vpop.f32.mrb[20].mxu0  ;;  %v1936_v25 = vsel %vm3831_vm2, %v4096_v16, %v4102_v23  ;;  %v2038_v26 = vsel %vm3831_vm2, %v4102_v23, %v4096_v16 }
0x17bc   : > { %v4122_v31 = vadd.f32 %v3091_v24, %v2837_v7  ;;  %v1622_v32 = vpop.f32.mrb[21].mxu0 }
0x17bd   : > { %v4124_v35 = vadd.f32 %v2837_v7, %v1622_v32 }
0x17be   : > { %v1635_v39 = vsel %vm3831_vm2, %v4120_v28, %v4122_v31  ;;  %v2344_v44 = vsel %vm3831_vm2, %v4122_v31, %v4120_v28 }
0x17bf   : > { %v1706_v46 = vadd.f32 %v1702_v53, %v1635_v39  ;;  %v1732_v48 = vsel %vm3831_vm2, %v4094_v29, %v4124_v35  ;;  %v2242_v27 = vsel %vm3831_vm2, %v4124_v35, %v4094_v29 }
0x17c1   : > { %v1708_v36 = vsub.f32 0.0, %v1706_v46 }
0x17c3   : > { %v1709_v41 = vmul.f32 1.442695, %v1708_v36 }
0x17c5   : > { %3406 = vpow2.f32 %v1709_v41 }
0x17c6   : > { %3408 = vtanh.f32 %v1706_v46 }
0x17cf   : > { %v3407_v49 = vpop.eup %3406 }
0x17d0   : > { %v1711_v51 = vadd.f32 1.0, %v3407_v49  ;;  %v3409_v42 = vpop.eup %3408 }
0x17d2   : > { %3410 = vrcp.f32 %v1711_v51 }
0x17dc   : > { %v3411_v43 = vpop.eup %3410 }
0x17dd   : > { %v1714_v47 = vsel %vm3879_vm5, %v3409_v42, %v3411_v43 }
0x17de   : > { %1717 = vrot.lane.b32.xlu0 %v1714_v47, %s3590_s14  ;;  %v1715_v37 = vmul.f32 0.0, %v1714_v47 }
0x1850   : > { %v1718_v52 = vpop.permute.xlu0 %1717 }
0x1851   : > { %v1720_v54 = vmul.f32 %v1718_v52, %v1714_v47 }
0x1853   : > { %1722 = vrot.lane.b32.xlu1 %v1720_v54, %s3591_s20 }
0x18c5   : > { %v1723_v56 = vpop.permute.xlu1 %1722 }
0x18c6   : > { %v1725_v57 = vadd.f32 %v1723_v56, %v1715_v37 }
0x18c8   : > { %3412 = vtanh.f32 %v1725_v57 }
0x18d2   : > { %v3413_v58 = vpop.eup %3412 }
0x18d3   : > { %1728 = vrot.lane.b32.xlu0 %v3413_v58, %s3590_s14 }
0x1945   : > { %v1729_v8 = vpop.permute.xlu0 %1728 }
0x1946   : > { %v1731_v59 = vmul.f32 %v1729_v8, %v1714_v47 }
0x1948   : > { %1734 = vrot.lane.b32.xlu1 %v1731_v59, %s3591_s20 }
0x19ba   : > { %v4148_v60 = vpop.permute.xlu1 %1734 }
0x19bb   : > { %3112 = vmatmul.mubr.msk.f32.vlgmr.msra.gmra.mrb[12].mxu1 %vm658_vm6, %v4148_v60 }
0x19bc   : > { %3260 = vmatpush3.bf16.msra.mxu1 %v4027_v62  ;;  %3133 = vmatprep.mubr.msk.f32.mxu1 %vm3588_vm0, %v3589_v1 }
0x19bd   : > { %3261 = vmatprep.subr.bf16.mxu1 %v3587_v0 }
0x19c0   : > { %3263 = vmatpush3.bf16.msra.mxu1 %v4033_v34 }
0x19c1   : > { %3270 = vmatprep.subr.bf16.mxu1 %v3587_v0 }
0x1a8e   : > { %v1804_v13 = vpop.f32.mrb[12].mxu1 }
0x1a8f   : > { %v1808_v63 = vadd.f32 %v1804_v13, %v1732_v48  ;;  %v3113_v2 = vpop.f32.mrb[13].mxu1 }
0x1a91   : > { %v1810_v30 = vsub.f32 0.0, %v1808_v63 }
0x1a93   : > { %v1811_v38 = vmul.f32 1.442695, %v1810_v30 }
0x1a95   : > { %3414 = vpow2.f32 %v1811_v38 }
0x1a96   : > { %3416 = vtanh.f32 %v1808_v63 }
0x1a9f   : > { %v3415_v3 = vpop.eup %3414 }
0x1aa0   : > { %v1813_v4 = vadd.f32 1.0, %v3415_v3  ;;  %v3417_v6 = vpop.eup %3416 }
0x1aa2   : > { %3418 = vrcp.f32 %v1813_v4 }
0x1aac   : > { %v3419_v9 = vpop.eup %3418 }
0x1aad   : > { %v1816_v10 = vsel %vm3879_vm5, %v3417_v6, %v3419_v9 }
0x1aae   : > { %1819 = vrot.lane.b32.xlu0 %v1816_v10, %s3590_s14  ;;  %v1817_v20 = vmul.f32 %v1816_v10, %v1725_v57 }
0x1b20   : > { %v1820_v11 = vpop.permute.xlu0 %1819 }
0x1b21   : > { %v1822_v12 = vmul.f32 %v1820_v11, %v1816_v10 }
0x1b23   : > { %1824 = vrot.lane.b32.xlu1 %v1822_v12, %s3591_s20 }
0x1b95   : > { %v1825_v53 = vpop.permute.xlu1 %1824 }
0x1b96   : > { %v1827_v61 = vadd.f32 %v1825_v53, %v1817_v20 }
0x1b98   : > { %3420 = vtanh.f32 %v1827_v61 }
0x1ba2   : > { %v3421_v7 = vpop.eup %3420 }
0x1ba3   : > { %1830 = vrot.lane.b32.xlu0 %v3421_v7, %s3590_s14 }
0x1c15   : > { %v1831_v14 = vpop.permute.xlu0 %1830 }
0x1c16   : > { %v1833_v40 = vmul.f32 %v1831_v14, %v1816_v10 }
0x1c18   : > { %1836 = vrot.lane.b32.xlu1 %v1833_v40, %s3591_s20 }
0x1c8a   : > { %v4164_v15 = vpop.permute.xlu1 %1836 }
0x1c8b   : > { %3123 = vmatmul.mubr.msk.f32.vlgmr.msra.gmra.mrb[22].mxu0 %vm658_vm6, %v4164_v15 }
0x1c8c   : > { %3266 = vmatpush3.bf16.msra.mxu0 %v4027_v62  ;;  %3144 = vmatprep.mubr.msk.f32.mxu0 %vm3588_vm0, %v3589_v1 }
0x1c8d   : > { %3267 = vmatprep.subr.bf16.mxu0 %v3587_v0 }
0x1c90   : > { %3269 = vmatpush3.bf16.msra.mxu0 %v4033_v34 }
0x1c91   : > { %3276 = vmatprep.subr.bf16.mxu0 %v3587_v0 }
0x1d5e   : > { %v1906_v5 = vpop.f32.mrb[22].mxu0 }
0x1d5f   : > { %v1910_v18 = vadd.f32 %v1906_v5, %v1834_v45  ;;  %v3124_v21 = vpop.f32.mrb[23].mxu0 }
0x1d61   : > { %v1912_v24 = vsub.f32 0.0, %v1910_v18 }
0x1d63   : > { %v1913_v32 = vmul.f32 1.442695, %v1912_v24 }
0x1d65   : > { %3422 = vpow2.f32 %v1913_v32 }
0x1d66   : > { %3424 = vtanh.f32 %v1910_v18 }
0x1d6f   : > { %v3423_v39 = vpop.eup %3422 }
0x1d70   : > { %v1915_v46 = vadd.f32 1.0, %v3423_v39  ;;  %v3425_v48 = vpop.eup %3424 }
0x1d72   : > { %3426 = vrcp.f32 %v1915_v46 }
0x1d7c   : > { %v3427_v36 = vpop.eup %3426 }
0x1d7d   : > { %v1918_v41 = vsel %vm3879_vm5, %v3425_v48, %v3427_v36 }
0x1d7e   : > { %1921 = vrot.lane.b32.xlu0 %v1918_v41, %s3590_s14  ;;  %v1919_v45 = vmul.f32 %v1918_v41, %v1827_v61 }
0x1df0   : > { %v1922_v49 = vpop.permute.xlu0 %1921 }
0x1df1   : > { %v1924_v51 = vmul.f32 %v1922_v49, %v1918_v41 }
0x1df3   : > { %1926 = vrot.lane.b32.xlu1 %v1924_v51, %s3591_s20 }
0x1e65   : > { %v1927_v42 = vpop.permute.xlu1 %1926 }
0x1e66   : > { %v1929_v43 = vadd.f32 %v1927_v42, %v1919_v45 }
0x1e68   : > { %3428 = vtanh.f32 %v1929_v43 }
0x1e72   : > { %v3429_v47 = vpop.eup %3428 }
0x1e73   : > { %1932 = vrot.lane.b32.xlu0 %v3429_v47, %s3590_s14 }
0x1ee5   : > { %v1933_v52 = vpop.permute.xlu0 %1932 }
0x1ee6   : > { %v1935_v54 = vmul.f32 %v1933_v52, %v1918_v41 }
0x1ee8   : > { %1938 = vrot.lane.b32.xlu1 %v1935_v54, %s3591_s20 }
0x1f5a   : > { %v4185_v37 = vpop.permute.xlu1 %1938 }
0x1f5b   : > { %3134 = vmatmul.mubr.msk.f32.vlgmr.msra.gmra.mrb[14].mxu1 %vm658_vm6, %v4185_v37 }
0x1f5c   : > { %3272 = vmatpush3.bf16.msra.mxu1 %v4027_v62  ;;  %3155 = vmatprep.mubr.msk.f32.mxu1 %vm3588_vm0, %v3589_v1 }
0x1f5d   : > { %3273 = vmatprep.subr.bf16.mxu1 %v3587_v0 }
0x1f60   : > { %3275 = vmatpush3.bf16.msra.mxu1 %v4033_v34 }
0x1f61   : > { %3282 = vmatprep.subr.bf16.mxu1 %v3587_v0 }
0x202e   : > { %v2008_v56 = vpop.f32.mrb[14].mxu1 }
0x202f   : > { %v2012_v57 = vadd.f32 %v2008_v56, %v1936_v25  ;;  %v3135_v58 = vpop.f32.mrb[15].mxu1 }
0x2031   : > { %v2014_v8 = vsub.f32 0.0, %v2012_v57 }
0x2033   : > { %v2015_v59 = vmul.f32 1.442695, %v2014_v8 }
0x2035   : > { %3430 = vpow2.f32 %v2015_v59 }
0x2036   : > { %3432 = vtanh.f32 %v2012_v57 }
0x203f   : > { %v3431_v13 = vpop.eup %3430 }
0x2040   : > { %v2017_v63 = vadd.f32 1.0, %v3431_v13  ;;  %v3433_v2 = vpop.eup %3432 }
0x2042   : > { %3434 = vrcp.f32 %v2017_v63 }
0x204c   : > { %v3435_v30 = vpop.eup %3434 }
0x204d   : > { %v2020_v38 = vsel %vm3879_vm5, %v3433_v2, %v3435_v30 }
0x204e   : > { %2023 = vrot.lane.b32.xlu0 %v2020_v38, %s3590_s14  ;;  %v2021_v25 = vmul.f32 %v2020_v38, %v1929_v43 }
0x20c0   : > { %v2024_v3 = vpop.permute.xlu0 %2023 }
0x20c1   : > { %v2026_v4 = vmul.f32 %v2024_v3, %v2020_v38 }
0x20c3   : > { %2028 = vrot.lane.b32.xlu1 %v2026_v4, %s3591_s20 }
0x2135   : > { %v2029_v6 = vpop.permute.xlu1 %2028 }
0x2136   : > { %v2031_v9 = vadd.f32 %v2029_v6, %v2021_v25 }
0x2138   : > { %3436 = vtanh.f32 %v2031_v9 }
0x2142   : > { %v3437_v10 = vpop.eup %3436 }
0x2143   : > { %2034 = vrot.lane.b32.xlu0 %v3437_v10, %s3590_s14 }
0x21b5   : > { %v2035_v11 = vpop.permute.xlu0 %2034 }
0x21b6   : > { %v2037_v12 = vmul.f32 %v2035_v11, %v2020_v38 }
0x21b8   : > { %2040 = vrot.lane.b32.xlu1 %v2037_v12, %s3591_s20 }
0x222a   : > { %v4206_v20 = vpop.permute.xlu1 %2040 }
0x222b   : > { %3145 = vmatmul.mubr.msk.f32.vlgmr.msra.gmra.mrb[24].mxu0 %vm658_vm6, %v4206_v20 }
0x222c   : > { %3278 = vmatpush3.bf16.msra.mxu0 %v4027_v62  ;;  %3166 = vmatprep.mubr.msk.f32.mxu0 %vm3588_vm0, %v3589_v1 }
0x222d   : > { %3279 = vmatprep.subr.bf16.mxu0 %v3587_v0 }
0x2230   : > { %3281 = vmatpush3.bf16.msra.mxu0 %v4033_v34 }
0x22fe   : > { %v2110_v53 = vpop.f32.mrb[24].mxu0 }
0x22ff   : > { %v2114_v61 = vadd.f32 %v2110_v53, %v2038_v26  ;;  %v3146_v7 = vpop.f32.mrb[25].mxu0 }
0x2301   : > { %v2116_v14 = vsub.f32 0.0, %v2114_v61 }
0x2303   : > { %v2117_v40 = vmul.f32 1.442695, %v2116_v14 }
0x2305   : > { %3438 = vpow2.f32 %v2117_v40 }
0x2306   : > { %3440 = vtanh.f32 %v2114_v61 }
0x230f   : > { %v3439_v5 = vpop.eup %3438 }
0x2310   : > { %v2119_v18 = vadd.f32 1.0, %v3439_v5  ;;  %v3441_v21 = vpop.eup %3440 }
0x2312   : > { %3442 = vrcp.f32 %v2119_v18 }
0x231c   : > { %v3443_v24 = vpop.eup %3442 }
0x231d   : > { %v2122_v32 = vsel %vm3879_vm5, %v3441_v21, %v3443_v24 }
0x231e   : > { %2125 = vrot.lane.b32.xlu0 %v2122_v32, %s3590_s14  ;;  %v2123_v16 = vmul.f32 %v2122_v32, %v2031_v9 }
0x2390   : > { %v2126_v39 = vpop.permute.xlu0 %2125 }
0x2391   : > { %v2128_v46 = vmul.f32 %v2126_v39, %v2122_v32 }
0x2393   : > { %2130 = vrot.lane.b32.xlu1 %v2128_v46, %s3591_s20 }
0x2405   : > { %v2131_v23 = vpop.permute.xlu1 %2130 }
0x2406   : > { %v2133_v26 = vadd.f32 %v2131_v23, %v2123_v16 }
0x2408   : > { %3444 = vtanh.f32 %v2133_v26 }
0x2412   : > { %v3445_v48 = vpop.eup %3444 }
0x2413   : > { %2136 = vrot.lane.b32.xlu0 %v3445_v48, %s3590_s14 }
0x2485   : > { %v2137_v36 = vpop.permute.xlu0 %2136 }
0x2486   : > { %v2139_v41 = vmul.f32 %v2137_v36, %v2122_v32 }
0x2488   : > { %2142 = vrot.lane.b32.xlu1 %v2139_v41, %s3591_s20 }
0x24fa   : > { %v4226_v49 = vpop.permute.xlu1 %2142 }
0x24fb   : > { %3156 = vmatmul.mubr.msk.f32.vlgmr.msra.gmra.mrb[16].mxu1 %vm658_vm6, %v4226_v49 }
0x24fc   : > { %3284 = vmatpush3.bf16.msra.mxu1 %v4027_v62  ;;  %3177 = vmatprep.mubr.msk.f32.mxu1 %vm3588_vm0, %v3589_v1 }
0x24fd   : > { %3285 = vmatprep.subr.bf16.mxu1 %v3587_v0 }
0x2500   : > { %3287 = vmatpush3.bf16.msra.mxu1 %v4033_v34 }
0x25ce   : > { %v2212_v51 = vpop.f32.mrb[16].mxu1 }
0x25cf   : > { %v2216_v45 = vadd.f32 %v2212_v51, %v2140_v50  ;;  %v3157_v42 = vpop.f32.mrb[17].mxu1 }
0x25d1   : > { %v2218_v43 = vsub.f32 0.0, %v2216_v45 }
0x25d3   : > { %v2219_v47 = vmul.f32 1.442695, %v2218_v43 }
0x25d5   : > { %3446 = vpow2.f32 %v2219_v47 }
0x25d6   : > { %3448 = vtanh.f32 %v2216_v45 }
0x25df   : > { %v3447_v52 = vpop.eup %3446 }
0x25e0   : > { %v2221_v62 = vadd.f32 1.0, %v3447_v52  ;;  %v3449_v1 = vpop.eup %3448 }
0x25e2   : > { %3450 = vrcp.f32 %v2221_v62 }
0x25ec   : > { %v3451_v54 = vpop.eup %3450 }
0x25ed   : > { %v2224_v0 = vsel %vm3879_vm5, %v3449_v1, %v3451_v54 }
0x25ee   : > { %2227 = vrot.lane.b32.xlu0 %v2224_v0, %s3590_s14  ;;  %v2225_v17 = vmul.f32 %v2224_v0, %v2133_v26 }
0x2660   : > { %v2228_v34 = vpop.permute.xlu0 %2227 }
0x2661   : > { %v2230_v56 = vmul.f32 %v2228_v34, %v2224_v0 }
0x2663   : > { %2232 = vrot.lane.b32.xlu1 %v2230_v56, %s3591_s20 }
0x26d5   : > { %v2233_v19 = vpop.permute.xlu1 %2232 }
0x26d6   : > { %v2235_v50 = vadd.f32 %v2233_v19, %v2225_v17 }
0x26d8   : > { %3452 = vtanh.f32 %v2235_v50 }
0x26e2   : > { %v3453_v57 = vpop.eup %3452 }
0x26e3   : > { %2238 = vrot.lane.b32.xlu0 %v3453_v57, %s3590_s14 }
0x2755   : > { %v2239_v58 = vpop.permute.xlu0 %2238 }
0x2756   : > { %v2241_v8 = vmul.f32 %v2239_v58, %v2224_v0 }
0x2758   : > { %2244 = vrot.lane.b32.xlu1 %v2241_v8, %s3591_s20 }
0x27ca   : > { %v4246_v59 = vpop.permute.xlu1 %2244 }
0x27cb   : > { %3167 = vmatmul.mubr.msk.f32.vlgmr.msra.gmra.mrb[26].mxu0 %vm658_vm6, %v4246_v59  ;;  %v2457_v36 = vsel %vm505_vm7, %v4185_v37, %v4246_v59  ;;  %v2462_v47 = vsel %vm505_vm7, %v4246_v59, %v4185_v37  ;;  %v2461_v59 = vsel %vm505_vm7, %v4226_v49, %v4206_v20 }
0x27cc   : > { %v2517_v41 = vsel %vm658_vm6, %v2457_v36, 0.0  ;;  %v2575_v52 = vsel %vm658_vm6, %v2462_v47, 0.0 }
0x289e   : > { %v2314_v13 = vpop.f32.mrb[26].mxu0 }
0x289f   : > { %v2318_v63 = vadd.f32 %v2314_v13, %v2242_v27  ;;  %v3168_v2 = vpop.f32.mrb[27].mxu0  ;;  %v2559_v13 = vsel %vm658_vm6, %v2461_v59, 0.0 }
0x28a1   : > { %v2320_v30 = vsub.f32 0.0, %v2318_v63 }
0x28a3   : > { %v2321_v38 = vmul.f32 1.442695, %v2320_v30 }
0x28a5   : > { %3454 = vpow2.f32 %v2321_v38 }
0x28a6   : > { %3456 = vtanh.f32 %v2318_v63 }
0x28af   : > { %v3455_v3 = vpop.eup %3454 }
0x28b0   : > { %v2323_v4 = vadd.f32 1.0, %v3455_v3  ;;  %v3457_v25 = vpop.eup %3456 }
0x28b2   : > { %3458 = vrcp.f32 %v2323_v4 }
0x28bc   : > { %v3459_v6 = vpop.eup %3458 }
0x28bd   : > { %v2326_v9 = vsel %vm3879_vm5, %v3457_v25, %v3459_v6 }
0x28be   : > { %2329 = vrot.lane.b32.xlu0 %v2326_v9, %s3590_s14  ;;  %v2327_v29 = vmul.f32 %v2326_v9, %v2235_v50 }
0x2930   : > { %v2330_v10 = vpop.permute.xlu0 %2329 }
0x2931   : > { %v2332_v11 = vmul.f32 %v2330_v10, %v2326_v9 }
0x2933   : > { %2334 = vrot.lane.b32.xlu1 %v2332_v11, %s3591_s20 }
0x29a5   : > { %v2335_v35 = vpop.permute.xlu1 %2334 }
0x29a6   : > { %v2337_v27 = vadd.f32 %v2335_v35, %v2327_v29 }
0x29a8   : > { %3460 = vtanh.f32 %v2337_v27 }
0x29b2   : > { %v3461_v12 = vpop.eup %3460 }
0x29b3   : > { %2340 = vrot.lane.b32.xlu0 %v3461_v12, %s3590_s14 }
0x2a25   : > { %v2341_v53 = vpop.permute.xlu0 %2340 }
0x2a26   : > { %v2343_v61 = vmul.f32 %v2341_v53, %v2326_v9 }
0x2a28   : > { %2346 = vrot.lane.b32.xlu1 %v2343_v61, %s3591_s20 }
0x2a9a   : > { %v2347_v7 = vpop.permute.xlu1 %2346 }
0x2a9b   : > { %3178 = vmatmul.mubr.msk.f32.vlgmr.msra.gmra.mrb[18].mxu1 %vm658_vm6, %v2347_v7  ;;  %v2454_v48 = vsel %vm505_vm7, %v4164_v15, %v2347_v7  ;;  %v2463_v51 = vsel %vm505_vm7, %v2347_v7, %v4164_v15  ;;  %v2460_v15 = vsel %vm505_vm7, %v4206_v20, %v4226_v49 }
0x2a9c   : > { %v2496_v55 = vsel %vm658_vm6, %v2454_v48, 0.0  ;;  %v2595_v45 = vsel %vm658_vm6, %v2463_v51, 0.0  ;;  %v2538_v62 = vsel %vm658_vm6, %v2460_v15, 0.0 }
0x2b6e   : > { %v2416_v14 = vpop.f32.mrb[18].mxu1 }
0x2b6f   : > { %v2420_v40 = vadd.f32 %v2416_v14, %v2344_v44  ;;  %v3179_v5 = vpop.f32.mrb[19].mxu1 }
0x2b71   : > { %v2422_v18 = vsub.f32 0.0, %v2420_v40 }
0x2b73   : > { %v2423_v21 = vmul.f32 1.442695, %v2422_v18 }
0x2b75   : > { %3462 = vpow2.f32 %v2423_v21 }
0x2b76   : > { %3464 = vtanh.f32 %v2420_v40 }
0x2b7f   : > { %v3463_v24 = vpop.eup %3462 }
0x2b80   : > { %v2425_v32 = vadd.f32 1.0, %v3463_v24  ;;  %v3465_v39 = vpop.eup %3464 }
0x2b82   : > { %3466 = vrcp.f32 %v2425_v32 }
0x2b8c   : > { %v3467_v46 = vpop.eup %3466 }
0x2b8d   : > { %v2428_v16 = vsel %vm3879_vm5, %v3465_v39, %v3467_v46 }
0x2b8e   : > { %2431 = vrot.lane.b32.xlu0 %v2428_v16, %s3590_s14  ;;  %v2429_v28 = vmul.f32 %v2428_v16, %v2337_v27 }
0x2c00   : > { %v2432_v33 = vpop.permute.xlu0 %2431 }
0x2c01   : > { %v2434_v23 = vmul.f32 %v2432_v33, %v2428_v16  ;;  %v4330_v33 = vld [vmem:[%s483_s5] ss:$0 sm:$0xff]  ;;  %s3520_s5 = sshll.u32 %s3593_s24, 4  ;;  %s3521_s5 = int_to_ptr.vmem [resolvable:$false] %s3520_s5 }
0x2c02   : > { %s3522_s11 = scalar_lea.vmem %s3521_s5, 512 }
0x2c03   : > { %2436 = vrot.lane.b32.xlu1 %v2434_v23, %s3591_s20 }
0x2c75   : > { %v2437_v31 = vpop.permute.xlu1 %2436 }
0x2c76   : > { %v2439_v44 = vadd.f32 %v2437_v31, %v2429_v28 }
0x2c78   : > { %3468 = vtanh.f32 %v2439_v44  ;;  %v4337_v44 = vld [vmem:[%s486_s16] ss:$0 sm:$0xff] }
0x2c82   : > { %v3469_v26 = vpop.eup %3468 }
0x2c83   : > { %2442 = vrot.lane.b32.xlu0 %v3469_v26, %s3590_s14 }
0x2ca2   : > { %2497 = vadd.xlane.f32.xlu0 %v2496_v55 }
0x2ca6   : > { %2518 = vadd.xlane.f32.xlu0 %v2517_v41 }
0x2caa   : > { %2596 = vadd.xlane.f32.xlu0 %v2595_v45 }
0x2cf5   : > { %v2443_v42 = vpop.permute.xlu0 %2442 }
0x2cf6   : > { %v2445_v43 = vmul.f32 %v2443_v42, %v2428_v16 }
0x2cf8   : > { %2448 = vrot.lane.b32.xlu1 %v2445_v43, %s3591_s20 }
0x2d1c   : > { %2576 = vadd.xlane.f32.xlu1 %v2575_v52 }
0x2d20   : > { %2539 = vadd.xlane.f32.xlu1 %v2538_v62 }
0x2d2f   : > { %v2498_v1 = vpop.xlane.xlu0 %2497 }
0x2d30   : > { %v2499_v54 = vmul.f32 0.03125, %v2498_v1 }
0x2d32   : > { %v2500_v34 = vsub.f32 %v2454_v48, %v2499_v54 }
0x2d33   : > { %v2519_v0 = vpop.xlane.xlu0 %2518 }
0x2d34   : > { %v2520_v56 = vmul.f32 0.03125, %v2519_v0  ;;  %v2501_v8 = vmul.f32 %v2500_v34, %v2500_v34 }
0x2d36   : > { %v2521_v50 = vsub.f32 %v2457_v36, %v2520_v56  ;;  %v2502_v63 = vsel %vm658_vm6, %v2501_v8, 0.0 }
0x2d37   : > { %v2597_v30 = vpop.xlane.xlu0 %2596 }
0x2d38   : > { %v2598_v38 = vmul.f32 0.03125, %v2597_v30 }
0x2d3a   : > { %v4314_v25 = vsub.f32 %v2463_v51, %v2598_v38 }
0x2d3c   : > { %v2600_v11 = vmul.f32 %v4314_v25, %v4314_v25 }
0x2d3e   : > { %v2601_v27 = vsel %vm658_vm6, %v2600_v11, 0.0 }
0x2d6a   : > { %v2449_v17 = vpop.permute.xlu1 %2448 }
0x2d6b   : > { %v2464_v37 = vsel %vm505_vm7, %v2449_v17, %v4148_v60  ;;  %v4302_v19 = vsel %vm505_vm7, %v4148_v60, %v2449_v17  ;;  %v2522_v60 = vmul.f32 %v2521_v50, %v2521_v50 }
0x2d6c   : > { %v2615_v57 = vsel %vm658_vm6, %v2464_v37, 0.0  ;;  %v2467_v58 = vsel %vm658_vm6, %v4302_v19, 0.0 }
0x2d6d   : > { %2616 = vadd.xlane.f32.xlu0 %v2615_v57  ;;  %2468 = vadd.xlane.f32.xlu1 %v2467_v58  ;;  %v2523_v2 = vsel %vm658_vm6, %v2522_v60, 0.0 }
0x2d71   : > { %2560 = vadd.xlane.f32.xlu0 %v2559_v13  ;;  %2503 = vadd.xlane.f32.xlu1 %v2502_v63 }
0x2d75   : > { %2524 = vadd.xlane.f32.xlu1 %v2523_v2 }
0x2da9   : > { %v2577_v3 = vpop.xlane.xlu1 %2576 }
0x2daa   : > { %v2578_v4 = vmul.f32 0.03125, %v2577_v3 }
0x2dac   : > { %v2579_v6 = vsub.f32 %v2462_v47, %v2578_v4 }
0x2dad   : > { %v2540_v9 = vpop.xlane.xlu1 %2539 }
0x2dae   : > { %v2541_v22 = vmul.f32 0.03125, %v2540_v9  ;;  %v2580_v20 = vmul.f32 %v2579_v6, %v2579_v6 }
0x2db0   : > { %v2542_v49 = vsub.f32 %v2460_v15, %v2541_v22  ;;  %v2581_v10 = vsel %vm658_vm6, %v2580_v20, 0.0 }
0x2db1   : > { %2582 = vadd.xlane.f32.xlu0 %v2581_v10 }
0x2db2   : > { %v2543_v29 = vmul.f32 %v2542_v49, %v2542_v49 }
0x2db4   : > { %v2544_v35 = vsel %vm658_vm6, %v2543_v29, 0.0 }
0x2db5   : > { %2545 = vadd.xlane.f32.xlu1 %v2544_v35  ;;  %2602 = vadd.xlane.f32.xlu0 %v2601_v27 }
0x2dfa   : > { %v2469_v12 = vpop.xlane.xlu1 %2468  ;;  %v2617_v53 = vpop.xlane.xlu0 %2616 }
0x2dfb   : > { %v2618_v61 = vmul.f32 0.03125, %v2617_v53 }
0x2dfd   : > { %v4321_v7 = vsub.f32 %v2464_v37, %v2618_v61 }
0x2dfe   : > { %v2504_v14 = vpop.xlane.xlu1 %2503  ;;  %v2561_v36 = vpop.xlane.xlu0 %2560 }
0x2dff   : > { %v2505_v40 = vmul.f32 0.03125, %v2504_v14  ;;  %v2620_v5 = vmul.f32 %v4321_v7, %v4321_v7  ;;  %v2562_v41 = vmul.f32 0.03125, %v2561_v36 }
0x2e01   : > { %v2506_v18 = vadd.f32 1e-05, %v2505_v40  ;;  %v2621_v21 = vsel %vm658_vm6, %v2620_v5, 0.0  ;;  %v2563_v51 = vsub.f32 %v2461_v59, %v2562_v41  ;;  %v2471_v59 = vmul.f32 0.03125, %v2469_v12 }
0x2e02   : > { %v2525_v24 = vpop.xlane.xlu1 %2524  ;;  %2622 = vadd.xlane.f32.xlu0 %v2621_v21 }
0x2e03   : > { %3470 = vrsqrt.f32 %v2506_v18  ;;  %v2526_v32 = vmul.f32 0.03125, %v2525_v24  ;;  %v2564_v45 = vmul.f32 %v2563_v51, %v2563_v51  ;;  %v2472_v63 = vsub.f32 %v4302_v19, %v2471_v59 }
0x2e05   : > { %v2527_v39 = vadd.f32 1e-05, %v2526_v32  ;;  %v2565_v42 = vsel %vm658_vm6, %v2564_v45, 0.0  ;;  %v2473_v60 = vmul.f32 %v2472_v63, %v2472_v63 }
0x2e07   : > { %3472 = vrsqrt.f32 %v2527_v39  ;;  %v2474_v2 = vsel %vm658_vm6, %v2473_v60, 0.0 }
0x2e0d   : > { %v3471_v46 = vpop.eup %3470 }
0x2e0e   : > { %v2508_v16 = vmul.f32 %v3471_v46, %v2500_v34 }
0x2e10   : > { %v2509_v31 = vmul.f32 %v4330_v33, %v2508_v16 }
0x2e11   : > { %v3473_v23 = vpop.eup %3472 }
0x2e12   : > { %v2529_v28 = vmul.f32 %v3473_v23, %v2521_v50  ;;  %v2510_v55 = vadd.f32 %v4337_v44, %v2509_v31 }
0x2e14   : > { %v2530_v26 = vmul.f32 %v4330_v33, %v2529_v28 }
0x2e16   : > { %v2531_v48 = vadd.f32 %v4337_v44, %v2530_v26 }
0x2e18   : > { %2533 = vrot.lane.b32.xlu1 %v2531_v48, %s3590_s14  ;;  %2512 = vrot.lane.b32.xlu0 %v2510_v55, %s3591_s20 }
0x2e37   : > { %2566 = vadd.xlane.f32.xlu0 %v2565_v42 }
0x2e3e   : > { %v2583_v43 = vpop.xlane.xlu0 %2582 }
0x2e3f   : > { %v2584_v47 = vmul.f32 0.03125, %v2583_v43 }
0x2e41   : > { %v2585_v52 = vadd.f32 1e-05, %v2584_v47 }
0x2e42   : > { %v2546_v15 = vpop.xlane.xlu1 %2545  ;;  %v2603_v58 = vpop.xlane.xlu0 %2602 }
0x2e43   : > { %v2547_v62 = vmul.f32 0.03125, %v2546_v15  ;;  %3474 = vrsqrt.f32 %v2585_v52  ;;  %v2604_v8 = vmul.f32 0.03125, %v2603_v58 }
0x2e45   : > { %v2548_v1 = vadd.f32 1e-05, %v2547_v62  ;;  %v2605_v13 = vadd.f32 1e-05, %v2604_v8 }
0x2e47   : > { %3476 = vrsqrt.f32 %v2548_v1 }
0x2e48   : > { %3478 = vrsqrt.f32 %v2605_v13 }
0x2e4d   : > { %v3475_v54 = vpop.eup %3474 }
0x2e4e   : > { %v2587_v56 = vmul.f32 %v3475_v54, %v2579_v6 }
0x2e50   : > { %v2588_v50 = vmul.f32 %v4330_v33, %v2587_v56 }
0x2e51   : > { %v3477_v0 = vpop.eup %3476 }
0x2e52   : > { %v2550_v34 = vmul.f32 %v3477_v0, %v2542_v49  ;;  %v2589_v57 = vadd.f32 %v4337_v44, %v2588_v50  ;;  %v3479_v30 = vpop.eup %3478 }
0x2e53   : > { %v2607_v38 = vmul.f32 %v3479_v30, %v4314_v25 }
0x2e54   : > { %v2551_v17 = vmul.f32 %v4330_v33, %v2550_v34 }
0x2e55   : > { %v2608_v3 = vmul.f32 %v4330_v33, %v2607_v38 }
0x2e56   : > { %v2552_v37 = vadd.f32 %v4337_v44, %v2551_v17 }
0x2e57   : > { %v2609_v6 = vadd.f32 %v4337_v44, %v2608_v3 }
0x2e58   : > { %2554 = vrot.lane.b32.xlu1 %v2552_v37, %s3592_s28 }
0x2e5c   : > { %2591 = vrot.lane.b32.xlu1 %v2589_v57, %s3591_s20 }
0x2e80   : > { %2475 = vadd.xlane.f32.xlu1 %v2474_v2 }
0x2e8a   : > { %v2534_v27 = vpop.permute.xlu1 %2533 }
0x2e8f   : > { %v2623_v4 = vpop.xlane.xlu0 %2622 }
0x2e90   : > { %v2624_v9 = vmul.f32 0.03125, %v2623_v4 }
0x2e91   : > { %2611 = vrot.lane.b32.xlu1 %v2609_v6, %s3590_s14  ;;  %s2812_s14 = sshll.u32 %s3747_s29, 4 }
0x2e92   : > { %v2625_v22 = vadd.f32 1e-05, %v2624_v9  ;;  %s454_s20 = scalar_lea.vmem [#allocation5], %s2812_s14 }
0x2e93   : > { %v2513_v25 = vpop.permute.xlu0 %2512  ;;  %s2650_s27 = sshll.u32 %s454_s20, 4  ;;  %s4375_s27 = int_to_ptr.vmem [resolvable:$true] %s2650_s27 }
0x2e94   : > { %3480 = vrsqrt.f32 %v2625_v22  ;;  %s3516_s13 = scalar_lea.vmem %s4375_s27, 256  ;;  %p3523_p9 = scmp.lt.s32.totalorder %s4375_s27, %s3521_s5 }
0x2e95   : > { %p3517_p6 = scmp.ne.s32.totalorder %s4375_s27, %s3516_s13  ;;  %p3524_p13 = scmp.lt.s32.totalorder %s3522_s11, %s3516_s13 }
0x2e97   : > { %p3518_p12 = pnand %p3517_p6, %p4442_p11  ;;  %p3525_p1 = por %p3524_p13, %p3523_p9 }
0x2e99   : > { %p3519_p8 = pneg %p3518_p12 }
0x2e9b   : > { %p3526_p3 = pnand %p3525_p1, %p3519_p8 }
0x2e9e   : > { %v3481_v19 = vpop.eup %3480 }
0x2e9f   : > { %v2627_v20 = vmul.f32 %v3481_v19, %v4321_v7 }
0x2ea1   : > { %v2628_v49 = vmul.f32 %v4330_v33, %v2627_v20 }
0x2ea3   : > { %v2629_v10 = vadd.f32 %v4337_v44, %v2628_v49 }
0x2ea5   : > { %2631 = vrot.lane.b32.xlu1 %v2629_v10, %s3592_s28 }
0x2ec4   : > { %v2567_v11 = vpop.xlane.xlu0 %2566 }
0x2ec5   : > { %v2568_v29 = vmul.f32 0.03125, %v2567_v11 }
0x2ec7   : > { %v2569_v35 = vadd.f32 1e-05, %v2568_v29 }
0x2ec9   : > { %3482 = vrsqrt.f32 %v2569_v35 }
0x2eca   : > { %v2555_v61 = vpop.permute.xlu1 %2554 }
0x2ece   : > { %v2592_v7 = vpop.permute.xlu1 %2591 }
0x2ed3   : > { %v3483_v12 = vpop.eup %3482 }
0x2ed4   : > { %v2571_v53 = vmul.f32 %v3483_v12, %v2563_v51 }
0x2ed6   : > { %v2572_v14 = vmul.f32 %v4330_v33, %v2571_v53 }
0x2ed8   : > { %v2573_v40 = vadd.f32 %v4337_v44, %v2572_v14 }
0x2eda   : > { %2574 = vst.msk [vmem:[%s454_s20 + $0x8] sm:$0xff] %vm658_vm6, %v2573_v40 }
0x2edb   : > { %2594 = vst.msk [vmem:[%s454_s20 + $0x8] sm:$0xff] %vm2515_vm8, %v2592_v7 }
0x2f0d   : > { %v2476_v5 = vpop.xlane.xlu1 %2475 }
0x2f0e   : > { %v2477_v18 = vmul.f32 0.03125, %v2476_v5 }
0x2f10   : > { %v2478_v21 = vadd.f32 1e-05, %v2477_v18 }
0x2f11   : > { %v2612_v24 = vpop.permute.xlu1 %2611 }
0x2f12   : > { %3484 = vrsqrt.f32 %v2478_v21  ;;  %2614 = vst.msk [vmem:[%s454_s20 + $0x8] sm:$0xff] %vm2536_vm9, %v2612_v24 }
0x2f17   : > { %v2632_v32 = vpop.permute.xlu1 %2631 }
0x2f18   : > { %2634 = vst.msk [vmem:[%s454_s20 + $0x8] sm:$0xff] %vm2557_vm10, %v2632_v32 }
0x2f1c   : > { %v3485_v39 = vpop.eup %3484 }
0x2f1d   : > { %v2480_v46 = vmul.f32 %v3485_v39, %v2472_v63 }
0x2f1f   : > { %v2487_v16 = vmul.f32 %v4330_v33, %v2480_v46 }
0x2f21   : > { %v2494_v23 = vadd.f32 %v4337_v44, %v2487_v16 }
0x2f23   : > { %2495 = vst.msk [vmem:[%s454_s20] sm:$0xff] %vm658_vm6, %v2494_v23 }
0x2f24   : > { %2516 = vst.msk [vmem:[%s454_s20] sm:$0xff] %vm2515_vm8, %v2513_v25 }
0x2f25   : > { %2537 = vst.msk [vmem:[%s454_s20] sm:$0xff] %vm2536_vm9, %v2534_v27 }
0x2f26   : > { %2558 = vst.msk [vmem:[%s454_s20] sm:$0xff] %vm2557_vm10, %v2555_v61 }
0x2f27   : > { %3529 = shalt.err (!%p3526_p3)
}
0x2f28   : > { %s3530_s29 = scalar_lea.hbm %s4373_s25, 256  ;;  %s3534_s28 = scalar_lea.hbm %s4426_s9, 768 }
0x2f29   : > { %p3531_p4 = scmp.ne.s32.totalorder %s4373_s25, %s3530_s29  ;;  %p3535_p2 = scmp.lt.u32.totalorder %s4373_s25, %s4426_s9 }
0x2f2a   : > { %p3536_p7 = scmp.lt.u32.totalorder %s3534_s28, %s3530_s29  ;;  %p3538_p6 = scmp.lt.u32.totalorder %s3530_s29, %s4373_s25 }
0x2f2b   : > { %p3532_p5 = pnand %p3531_p4, %p4442_p11 }
0x2f2c   : > { %p3537_p10 = por %p3536_p7, %p3535_p2 }
0x2f2d   : > { %p3533_p0 = pneg %p3532_p5 }
0x2f2e   : > { %p3539_p12 = por %p3538_p6, %p3537_p10 }
0x2f30   : > { %p3540_p8 = pnand %p3539_p12, %p3533_p0 }
0x2f32   : > { %3543 = shalt.err (!%p3540_p8)
}
0x2f33   : > { %3290 = dma.vmem_to_hbm [thread:$0]  (%p4442_p11), %s4375_s27, 256, %s4373_s25, %s2636_s23  }
0x2f34 PF: > { %p3301_p9 = scmp.ge.s32.totalorder %s3582_s12, 2  ;;  %s2662_s17 = sand.u32 1, %s3570_s30  }
0x2f35   : > { %p4443_p13 = scmp.ne.s32.totalorder %s4435_s22, 0  ;;  %s2663_s19 = scalar_lea.sflag [#allocation4], %s2662_s17 }
0x2f37   : > { %p3297_p1 = pnand %p3301_p9, %p4443_p13 }
0x2f39   : > { %3565 = dma.done.wait (!%p3297_p1), %s2663_s19, 256  }
0x2f3a   : > { %3567 = vsyncadd (!%p3297_p1), %s2663_s19, 4294967040  ;;  %s4444_s26 = sld [smem:[#allocation8_spill]]  ;;  %s4445_s11 = sld [smem:[#allocation9_spill]] }
0x2f3b   : > { %p22_p3 = scmp.ge.s32.totalorder %s3669_s15, 5   ;;  %s4446_s30 = smov %s3574_s10 }
0x2f3c   : > { %s4448_s12 = smov %s3669_s15 }
0x2f3d   :  { %24 = sbr.rel (!%p22_p3) target bundleno = 7 (0x7), region = 125 }
0x2f40   : > { %s4447_s10 = smov %s4444_s26 }
0x2f44   :  { %2668 = vsyncpa [#allocation3], 1 }
0x2f45   :  { %2670 = vsyncpa [#allocation3 + $0x1], 1 }
0x2f46   :  { %2671 = vsyncpa [#allocation4], 1 }
0x2f47   :  { %2673 = vsyncpa [#allocation4 + $0x1], 1 }

</bundles_post_ra>
